<compile_context>
chip_gen: v7x
topology: tpu7x:2x2x1
jax: 0.10.0
libtpu: 0.0.40
codegen_flags: <defaults>
</compile_context>

<pallas_src>
from functools import partial

import jax
import jax.numpy as jnp
import numpy as np
from jax.experimental import pallas as pl
from jax.experimental.pallas import tpu as pltpu


# ------------------------------------------------------------------ kernel --

def _mbconv_kernel(x_ref, we_ref, s0_ref, b0_ref, wd_ref, s1_ref, b1_ref,
                   mask_ref, wse1_ref, bse1_ref, wse2_ref, bse2_ref,
                   wp_ref, s2_ref, b2_ref, o_ref, *, k, H, W, id_skip):
    """Fully fused MBConv forward for one image, flattened-NCHW (C, H*W) layout.

    Shapes (channels on sublanes, spatial H*W on lanes):
      x_ref:  (1, Cin, HW)       we_ref: (Cexp, Cin)     s0/b0:    (Cexp, 1)
      wd_ref: (Cexp, k*k)        s1/b1:  (Cexp, 1)       mask_ref: (k*k, HW)
      wse1:   (Cexp, sq)         bse1:   (1, sq)
      wse2:   (Cexp, sq)         bse2:   (Cexp, 1)
      wp_ref: (Cin, Cexp)        s2/b2:  (Cin, 1)        o_ref:    (1, Cin, HW)
    """
    HW = H * W
    p = (k - 1) // 2

    x = x_ref[0]                                                      # (Cin, HW)

    # ---- expand 1x1 conv (w^T @ x keeps H*W on the lane axis) + BN0 + swish
    y = jnp.dot(we_ref[...], x, preferred_element_type=jnp.float32)   # (Cexp, HW)
    y = y * s0_ref[...] + b0_ref[...]
    y = y * jax.nn.sigmoid(y)

    # ---- depthwise kxk, stride 1, 'same' zero padding.
    #      A spatial offset (dh, dw) is a lane roll by dh*W + dw (XLU slot) plus
    #      a precomputed boundary mask that zeroes wrapped / out-of-image taps.
    taps = wd_ref[...]                                                # (Cexp, k*k)
    masks = mask_ref[...]                                             # (k*k, HW)
    acc = jnp.zeros_like(y)
    for kh in range(k):
        dh = kh - p
        for kw in range(k):
            dw = kw - p
            t = kh * k + kw
            tap = taps[:, t:t + 1]                                    # (Cexp, 1)
            d = dh * W + dw
            if d == 0:
                acc = acc + y * tap
            else:
                shifted = pltpu.roll(y, shift=(-d) % HW, axis=1)      # out[i] = y[i + d]
                acc = acc + shifted * masks[t:t + 1, :] * tap
    z = acc * s1_ref[...] + b1_ref[...]
    z = z * jax.nn.sigmoid(z)                                         # (Cexp, HW)

    # ---- squeeze-and-excite, entirely in VMEM (no extra pass over z)
    pooled = jnp.sum(z, axis=1, keepdims=True) * (1.0 / HW)           # (Cexp, 1)
    s = jnp.sum(wse1_ref[...] * pooled, axis=0, keepdims=True) + bse1_ref[...]
    s = s * jax.nn.sigmoid(s)                                         # (1, sq)
    g = jnp.sum(wse2_ref[...] * s, axis=1, keepdims=True) + bse2_ref[...]
    g = jax.nn.sigmoid(g)                                             # (Cexp, 1)
    z = z * g

    # ---- project 1x1 conv + BN2 affine (+ id_skip residual); lane-dense store
    out = jnp.dot(wp_ref[...], z, preferred_element_type=jnp.float32)  # (Cin, HW)
    out = out * s2_ref[...] + b2_ref[...]
    if id_skip:
        # TODO(synk): train-mode Dropout2d before the skip is eval-mode identity.
        out = out + x
    o_ref[0] = out


# ---------------------------------------------------------------- wrapper ---

def _dw_boundary_masks(H, W, k):
    """(k*k, H*W) f32: 1.0 where the tap reads inside the image, else 0.0."""
    p = (k - 1) // 2
    hh, ww = np.meshgrid(np.arange(H), np.arange(W), indexing="ij")
    hh = hh.reshape(-1)
    ww = ww.reshape(-1)
    m = np.zeros((k * k, H * W), np.float32)
    for kh in range(k):
        for kw in range(k):
            dh, dw = kh - p, kw - p
            valid = ((hh + dh >= 0) & (hh + dh < H) &
                     (ww + dw >= 0) & (ww + dw < W))
            m[kh * k + kw] = valid.astype(np.float32)
    return jnp.asarray(m)


def _fuse_bn(bn, eps):
    scale = bn["gamma"] / jnp.sqrt(bn["var"] + eps)
    shift = bn["beta"] - bn["mean"] * scale
    return scale, shift


def mbconv_forward(params, x_nchw, k, *, stride=1, id_skip=True):
    """MBConvBlock forward (inference).  stride must be 1; id_skip mirrors the
    PyTorch condition (id_skip and stride==1 and in_filters==out_filters)."""
    assert stride == 1, "TODO(synk): stride>1 depthwise path not implemented"
    eps = params["eps"]
    N, Cin, H, W = x_nchw.shape
    HW = H * W

    # Flattened NCHW: channels -> sublanes, spatial -> lanes.  No transposes.
    x = x_nchw.reshape(N, Cin, HW)

    s0, b0 = _fuse_bn(params["bn0"], eps)
    s1, b1 = _fuse_bn(params["bn1"], eps)
    s2, b2 = _fuse_bn(params["bn2"], eps)

    we_t = params["w_expand"].T               # (Cexp, Cin)
    wd_t = params["w_dw"].T                   # (Cexp, k*k)
    wse1 = params["w_se1"]                    # (Cexp, sq)
    bse1 = params["b_se1"].reshape(1, -1)     # (1, sq)
    wse2_t = params["w_se2"].T                # (Cexp, sq)
    bse2 = params["b_se2"].reshape(-1, 1)     # (Cexp, 1)
    wp_t = params["w_proj"].T                 # (Cin, Cexp)

    Cexp = we_t.shape[0]
    sq = wse1.shape[1]
    masks = _dw_boundary_masks(H, W, k)       # (k*k, HW) constants

    out = pl.pallas_call(
        partial(_mbconv_kernel, k=k, H=H, W=W, id_skip=id_skip),
        out_shape=jax.ShapeDtypeStruct((N, Cin, HW), jnp.float32),
        grid_spec=pltpu.PrefetchScalarGridSpec(
            num_scalar_prefetch=0,
            grid=(N,),
            in_specs=[
                pl.BlockSpec((1, Cin, HW), lambda n: (n, 0, 0)),    # x (+ residual)
                pl.BlockSpec((Cexp, Cin), lambda n: (0, 0)),        # w_expand^T
                pl.BlockSpec((Cexp, 1), lambda n: (0, 0)),          # bn0 scale
                pl.BlockSpec((Cexp, 1), lambda n: (0, 0)),          # bn0 shift
                pl.BlockSpec((Cexp, k * k), lambda n: (0, 0)),      # depthwise taps
                pl.BlockSpec((Cexp, 1), lambda n: (0, 0)),          # bn1 scale
                pl.BlockSpec((Cexp, 1), lambda n: (0, 0)),          # bn1 shift
                pl.BlockSpec((k * k, HW), lambda n: (0, 0)),        # boundary masks
                pl.BlockSpec((Cexp, sq), lambda n: (0, 0)),         # w_se1
                pl.BlockSpec((1, sq), lambda n: (0, 0)),            # b_se1
                pl.BlockSpec((Cexp, sq), lambda n: (0, 0)),         # w_se2^T
                pl.BlockSpec((Cexp, 1), lambda n: (0, 0)),          # b_se2
                pl.BlockSpec((Cin, Cexp), lambda n: (0, 0)),        # w_proj^T
                pl.BlockSpec((Cin, 1), lambda n: (0, 0)),           # bn2 scale
                pl.BlockSpec((Cin, 1), lambda n: (0, 0)),           # bn2 shift
            ],
            out_specs=pl.BlockSpec((1, Cin, HW), lambda n: (n, 0, 0)),
        ),
        compiler_params=pltpu.CompilerParams(
            dimension_semantics=("parallel",),       # N images across v7x's 2 TCs
            vmem_limit_bytes=32 * 1024 * 1024,
        ),
    )(x, we_t, s0.reshape(-1, 1), b0.reshape(-1, 1), wd_t,
      s1.reshape(-1, 1), b1.reshape(-1, 1), masks,
      wse1, bse1, wse2_t, bse2, wp_t, s2.reshape(-1, 1), b2.reshape(-1, 1))

    return out.reshape(N, Cin, H, W)


# --------------------------------------------------------------- reference ---

def reference_forward(params, x_nchw, k):
    eps = params["eps"]
    x = jnp.transpose(x_nchw, (0, 2, 3, 1))

    def bn(y, p):
        scale = p["gamma"] / jnp.sqrt(p["var"] + eps)
        return y * scale + (p["beta"] - p["mean"] * scale)

    def swish(y):
        return y * jax.nn.sigmoid(y)

    y = swish(bn(jnp.einsum("nhwc,cd->nhwd", x, params["w_expand"]), params["bn0"]))
    H, W = x.shape[1], x.shape[2]
    pad = (k - 1) // 2
    yp = jnp.pad(y, ((0, 0), (pad, pad), (pad, pad), (0, 0)))
    acc = 0.0
    for kh in range(k):
        for kw in range(k):
            acc = acc + yp[:, kh:kh + H, kw:kw + W, :] * params["w_dw"][kh * k + kw]
    y = swish(bn(acc, params["bn1"]))
    pooled = jnp.mean(y, axis=(1, 2))
    s = swish(pooled @ params["w_se1"] + params["b_se1"])
    s = jax.nn.sigmoid(s @ params["w_se2"] + params["b_se2"])
    y = y * s[:, None, None, :]
    y = bn(jnp.einsum("nhwc,cd->nhwd", y, params["w_proj"]), params["bn2"])
    y = y + x
    return jnp.transpose(y, (0, 3, 1, 2))


# ------------------------------------------------------------------- params --

def init_params(key, cin, expand_ratio, k, se_ratio, eps=1e-3):
    oup = cin * expand_ratio
    sq = max(1, int(cin * se_ratio))
    keys = jax.random.split(key, 10)

    def bn_params(kk, c):
        kg, kb, km, kv = jax.random.split(kk, 4)
        return dict(
            gamma=jax.random.uniform(kg, (c,), jnp.float32, 0.8, 1.2),
            beta=jax.random.normal(kb, (c,), jnp.float32) * 0.1,
            mean=jax.random.normal(km, (c,), jnp.float32) * 0.1,
            var=jax.random.uniform(kv, (c,), jnp.float32, 0.5, 1.5),
        )

    return dict(
        w_expand=jax.random.normal(keys[0], (cin, oup), jnp.float32) * 0.1,
        bn0=bn_params(keys[1], oup),
        w_dw=jax.random.normal(keys[2], (k * k, oup), jnp.float32) * 0.1,
        bn1=bn_params(keys[3], oup),
        w_se1=jax.random.normal(keys[4], (oup, sq), jnp.float32) * 0.1,
        b_se1=jax.random.normal(keys[5], (1, sq), jnp.float32) * 0.1,
        w_se2=jax.random.normal(keys[6], (sq, oup), jnp.float32) * 0.1,
        b_se2=jax.random.normal(keys[7], (1, oup), jnp.float32) * 0.1,
        w_proj=jax.random.normal(keys[8], (oup, cin), jnp.float32) * 0.1,
        bn2=bn_params(keys[9], cin),
        eps=eps,
    )


# --------------------------------------------------------------------- main --

if __name__ == "__main__":
    key = jax.random.PRNGKey(0)
    kp, kx = jax.random.split(key)

    N, Cin, H, W = 2, 8, 16, 16        # batch, input_filters, spatial
    expand_ratio = 4                   # oup = 32
    ksize = 3                          # depthwise kernel size, stride 1
    se_ratio = 0.25                    # squeezed channels = 2

    params = init_params(kp, Cin, expand_ratio, ksize, se_ratio)
    x = jax.random.normal(kx, (N, Cin, H, W), jnp.float32)

    out = mbconv_forward(params, x, k=ksize)
    out = jax.block_until_ready(out)

    ref = reference_forward(params, x, k=ksize)
    assert out.shape == (N, Cin, H, W)
    np.testing.assert_allclose(np.asarray(out), np.asarray(ref), rtol=1e-4, atol=2e-4)

    print("KERNEL_OK")
</pallas_src>

<mosaic_0001>
module attributes {stable_mosaic.version = 11 : i64} {
  func.func @_mbconv_kernel(%arg0: i32, %arg1: memref<1x8x256xf32, #tpu.memory_space<vmem>>, %arg2: memref<32x8xf32, #tpu.memory_space<vmem>>, %arg3: memref<32x1xf32, #tpu.memory_space<vmem>>, %arg4: memref<32x1xf32, #tpu.memory_space<vmem>>, %arg5: memref<32x9xf32, #tpu.memory_space<vmem>>, %arg6: memref<32x1xf32, #tpu.memory_space<vmem>>, %arg7: memref<32x1xf32, #tpu.memory_space<vmem>>, %arg8: memref<9x256xf32, #tpu.memory_space<vmem>>, %arg9: memref<32x2xf32, #tpu.memory_space<vmem>>, %arg10: memref<1x2xf32, #tpu.memory_space<vmem>>, %arg11: memref<32x2xf32, #tpu.memory_space<vmem>>, %arg12: memref<32x1xf32, #tpu.memory_space<vmem>>, %arg13: memref<8x32xf32, #tpu.memory_space<vmem>>, %arg14: memref<8x1xf32, #tpu.memory_space<vmem>>, %arg15: memref<8x1xf32, #tpu.memory_space<vmem>>, %arg16: memref<1x8x256xf32, #tpu.memory_space<vmem>>) attributes {dimension_semantics = [#tpu.dimension_semantics<parallel>], iteration_bounds = array<i64: 2>, scalar_prefetch = 0 : i64, scratch_operands = 0 : i64, tpu.core_type = #tpu.core_type<tc>, window_params = [{transform_indices = @transform_0, window_bounds = array<i64: 1, 8, 256>}, {pipeline_mode = #tpu.pipeline_mode<synchronous>, transform_indices = @transform_1, window_bounds = array<i64: 32, 8>}, {pipeline_mode = #tpu.pipeline_mode<synchronous>, transform_indices = @transform_2, window_bounds = array<i64: 32, 1>}, {pipeline_mode = #tpu.pipeline_mode<synchronous>, transform_indices = @transform_3, window_bounds = array<i64: 32, 1>}, {pipeline_mode = #tpu.pipeline_mode<synchronous>, transform_indices = @transform_4, window_bounds = array<i64: 32, 9>}, {pipeline_mode = #tpu.pipeline_mode<synchronous>, transform_indices = @transform_5, window_bounds = array<i64: 32, 1>}, {pipeline_mode = #tpu.pipeline_mode<synchronous>, transform_indices = @transform_6, window_bounds = array<i64: 32, 1>}, {pipeline_mode = #tpu.pipeline_mode<synchronous>, transform_indices = @transform_7, window_bounds = array<i64: 9, 256>}, {pipeline_mode = #tpu.pipeline_mode<synchronous>, transform_indices = @transform_8, window_bounds = array<i64: 32, 2>}, {pipeline_mode = #tpu.pipeline_mode<synchronous>, transform_indices = @transform_9, window_bounds = array<i64: 1, 2>}, {pipeline_mode = #tpu.pipeline_mode<synchronous>, transform_indices = @transform_10, window_bounds = array<i64: 32, 2>}, {pipeline_mode = #tpu.pipeline_mode<synchronous>, transform_indices = @transform_11, window_bounds = array<i64: 32, 1>}, {pipeline_mode = #tpu.pipeline_mode<synchronous>, transform_indices = @transform_12, window_bounds = array<i64: 8, 32>}, {pipeline_mode = #tpu.pipeline_mode<synchronous>, transform_indices = @transform_13, window_bounds = array<i64: 8, 1>}, {pipeline_mode = #tpu.pipeline_mode<synchronous>, transform_indices = @transform_14, window_bounds = array<i64: 8, 1>}, {transform_indices = @transform_15, window_bounds = array<i64: 1, 8, 256>}]} {
    %c0 = arith.constant 0 : index
    %c0_0 = arith.constant 0 : index
    %c0_1 = arith.constant 0 : index
    %0 = vector.load %arg1[%c0, %c0_0, %c0_1] : memref<1x8x256xf32, #tpu.memory_space<vmem>>, vector<1x8x256xf32>
    %1 = vector.shape_cast %0 : vector<1x8x256xf32> to vector<8x256xf32>
    %c0_2 = arith.constant 0 : index
    %c0_3 = arith.constant 0 : index
    %2 = vector.load %arg2[%c0_2, %c0_3] : memref<32x8xf32, #tpu.memory_space<vmem>>, vector<32x8xf32>
    %cst = arith.constant dense<0.000000e+00> : vector<32x256xf32>
    %3 = tpu.matmul %2, %1, %cst {dimension_numbers = #tpu.dot_dimension_numbers<[1], [0], [0], [1], [0, 0, 1, 1], [], []>} : vector<32x8xf32>, vector<8x256xf32>, vector<32x256xf32> -> vector<32x256xf32>
    %c0_4 = arith.constant 0 : index
    %c0_5 = arith.constant 0 : index
    %4 = vector.load %arg3[%c0_4, %c0_5] : memref<32x1xf32, #tpu.memory_space<vmem>>, vector<32x1xf32>
    %5 = vector.broadcast %4 : vector<32x1xf32> to vector<32x256xf32>
    %6 = arith.mulf %3, %5 : vector<32x256xf32>
    %c0_6 = arith.constant 0 : index
    %c0_7 = arith.constant 0 : index
    %7 = vector.load %arg4[%c0_6, %c0_7] : memref<32x1xf32, #tpu.memory_space<vmem>>, vector<32x1xf32>
    %8 = vector.broadcast %7 : vector<32x1xf32> to vector<32x256xf32>
    %9 = arith.addf %6, %8 : vector<32x256xf32>
    %10 = arith.negf %9 : vector<32x256xf32>
    %11 = math.exp %10 : vector<32x256xf32>
    %cst_8 = arith.constant 1.000000e+00 : f32
    %12 = vector.broadcast %cst_8 : f32 to vector<32x256xf32>
    %13 = arith.addf %12, %11 : vector<32x256xf32>
    %14 = arith.divf %12, %13 : vector<32x256xf32>
    %15 = arith.mulf %9, %14 : vector<32x256xf32>
    %c0_9 = arith.constant 0 : index
    %c0_10 = arith.constant 0 : index
    %16 = vector.load %arg5[%c0_9, %c0_10] : memref<32x9xf32, #tpu.memory_space<vmem>>, vector<32x9xf32>
    %c0_11 = arith.constant 0 : index
    %c0_12 = arith.constant 0 : index
    %17 = vector.load %arg8[%c0_11, %c0_12] : memref<9x256xf32, #tpu.memory_space<vmem>>, vector<9x256xf32>
    %cst_13 = arith.constant 0.000000e+00 : f32
    %18 = vector.broadcast %cst_13 : f32 to vector<32x256xf32>
    %19 = vector.extract_strided_slice %16 {offsets = [0, 0], sizes = [32, 1], strides = [1, 1]} : vector<32x9xf32> to vector<32x1xf32>
    %c17_i32 = arith.constant 17 : i32
    %20 = tpu.dynamic_rotate %15 by %c17_i32 dim 1 : vector<32x256xf32>, i32 -> vector<32x256xf32>
    %21 = vector.extract_strided_slice %17 {offsets = [0, 0], sizes = [1, 256], strides = [1, 1]} : vector<9x256xf32> to vector<1x256xf32>
    %22 = vector.broadcast %21 : vector<1x256xf32> to vector<32x256xf32>
    %23 = arith.mulf %20, %22 : vector<32x256xf32>
    %24 = vector.broadcast %19 : vector<32x1xf32> to vector<32x256xf32>
    %25 = arith.mulf %23, %24 : vector<32x256xf32>
    %26 = arith.addf %18, %25 : vector<32x256xf32>
    %27 = vector.extract_strided_slice %16 {offsets = [0, 1], sizes = [32, 1], strides = [1, 1]} : vector<32x9xf32> to vector<32x1xf32>
    %c16_i32 = arith.constant 16 : i32
    %28 = tpu.dynamic_rotate %15 by %c16_i32 dim 1 : vector<32x256xf32>, i32 -> vector<32x256xf32>
    %29 = vector.extract_strided_slice %17 {offsets = [1, 0], sizes = [1, 256], strides = [1, 1]} : vector<9x256xf32> to vector<1x256xf32>
    %30 = vector.broadcast %29 : vector<1x256xf32> to vector<32x256xf32>
    %31 = arith.mulf %28, %30 : vector<32x256xf32>
    %32 = vector.broadcast %27 : vector<32x1xf32> to vector<32x256xf32>
    %33 = arith.mulf %31, %32 : vector<32x256xf32>
    %34 = arith.addf %26, %33 : vector<32x256xf32>
    %35 = vector.extract_strided_slice %16 {offsets = [0, 2], sizes = [32, 1], strides = [1, 1]} : vector<32x9xf32> to vector<32x1xf32>
    %c15_i32 = arith.constant 15 : i32
    %36 = tpu.dynamic_rotate %15 by %c15_i32 dim 1 : vector<32x256xf32>, i32 -> vector<32x256xf32>
    %37 = vector.extract_strided_slice %17 {offsets = [2, 0], sizes = [1, 256], strides = [1, 1]} : vector<9x256xf32> to vector<1x256xf32>
    %38 = vector.broadcast %37 : vector<1x256xf32> to vector<32x256xf32>
    %39 = arith.mulf %36, %38 : vector<32x256xf32>
    %40 = vector.broadcast %35 : vector<32x1xf32> to vector<32x256xf32>
    %41 = arith.mulf %39, %40 : vector<32x256xf32>
    %42 = arith.addf %34, %41 : vector<32x256xf32>
    %43 = vector.extract_strided_slice %16 {offsets = [0, 3], sizes = [32, 1], strides = [1, 1]} : vector<32x9xf32> to vector<32x1xf32>
    %c1_i32 = arith.constant 1 : i32
    %44 = tpu.dynamic_rotate %15 by %c1_i32 dim 1 : vector<32x256xf32>, i32 -> vector<32x256xf32>
    %45 = vector.extract_strided_slice %17 {offsets = [3, 0], sizes = [1, 256], strides = [1, 1]} : vector<9x256xf32> to vector<1x256xf32>
    %46 = vector.broadcast %45 : vector<1x256xf32> to vector<32x256xf32>
    %47 = arith.mulf %44, %46 : vector<32x256xf32>
    %48 = vector.broadcast %43 : vector<32x1xf32> to vector<32x256xf32>
    %49 = arith.mulf %47, %48 : vector<32x256xf32>
    %50 = arith.addf %42, %49 : vector<32x256xf32>
    %51 = vector.extract_strided_slice %16 {offsets = [0, 4], sizes = [32, 1], strides = [1, 1]} : vector<32x9xf32> to vector<32x1xf32>
    %52 = vector.broadcast %51 : vector<32x1xf32> to vector<32x256xf32>
    %53 = arith.mulf %15, %52 : vector<32x256xf32>
    %54 = arith.addf %50, %53 : vector<32x256xf32>
    %55 = vector.extract_strided_slice %16 {offsets = [0, 5], sizes = [32, 1], strides = [1, 1]} : vector<32x9xf32> to vector<32x1xf32>
    %c255_i32 = arith.constant 255 : i32
    %56 = tpu.dynamic_rotate %15 by %c255_i32 dim 1 : vector<32x256xf32>, i32 -> vector<32x256xf32>
    %57 = vector.extract_strided_slice %17 {offsets = [5, 0], sizes = [1, 256], strides = [1, 1]} : vector<9x256xf32> to vector<1x256xf32>
    %58 = vector.broadcast %57 : vector<1x256xf32> to vector<32x256xf32>
    %59 = arith.mulf %56, %58 : vector<32x256xf32>
    %60 = vector.broadcast %55 : vector<32x1xf32> to vector<32x256xf32>
    %61 = arith.mulf %59, %60 : vector<32x256xf32>
    %62 = arith.addf %54, %61 : vector<32x256xf32>
    %63 = vector.extract_strided_slice %16 {offsets = [0, 6], sizes = [32, 1], strides = [1, 1]} : vector<32x9xf32> to vector<32x1xf32>
    %c241_i32 = arith.constant 241 : i32
    %64 = tpu.dynamic_rotate %15 by %c241_i32 dim 1 : vector<32x256xf32>, i32 -> vector<32x256xf32>
    %65 = vector.extract_strided_slice %17 {offsets = [6, 0], sizes = [1, 256], strides = [1, 1]} : vector<9x256xf32> to vector<1x256xf32>
    %66 = vector.broadcast %65 : vector<1x256xf32> to vector<32x256xf32>
    %67 = arith.mulf %64, %66 : vector<32x256xf32>
    %68 = vector.broadcast %63 : vector<32x1xf32> to vector<32x256xf32>
    %69 = arith.mulf %67, %68 : vector<32x256xf32>
    %70 = arith.addf %62, %69 : vector<32x256xf32>
    %71 = vector.extract_strided_slice %16 {offsets = [0, 7], sizes = [32, 1], strides = [1, 1]} : vector<32x9xf32> to vector<32x1xf32>
    %c240_i32 = arith.constant 240 : i32
    %72 = tpu.dynamic_rotate %15 by %c240_i32 dim 1 : vector<32x256xf32>, i32 -> vector<32x256xf32>
    %73 = vector.extract_strided_slice %17 {offsets = [7, 0], sizes = [1, 256], strides = [1, 1]} : vector<9x256xf32> to vector<1x256xf32>
    %74 = vector.broadcast %73 : vector<1x256xf32> to vector<32x256xf32>
    %75 = arith.mulf %72, %74 : vector<32x256xf32>
    %76 = vector.broadcast %71 : vector<32x1xf32> to vector<32x256xf32>
    %77 = arith.mulf %75, %76 : vector<32x256xf32>
    %78 = arith.addf %70, %77 : vector<32x256xf32>
    %79 = vector.extract_strided_slice %16 {offsets = [0, 8], sizes = [32, 1], strides = [1, 1]} : vector<32x9xf32> to vector<32x1xf32>
    %c239_i32 = arith.constant 239 : i32
    %80 = tpu.dynamic_rotate %15 by %c239_i32 dim 1 : vector<32x256xf32>, i32 -> vector<32x256xf32>
    %81 = vector.extract_strided_slice %17 {offsets = [8, 0], sizes = [1, 256], strides = [1, 1]} : vector<9x256xf32> to vector<1x256xf32>
    %82 = vector.broadcast %81 : vector<1x256xf32> to vector<32x256xf32>
    %83 = arith.mulf %80, %82 : vector<32x256xf32>
    %84 = vector.broadcast %79 : vector<32x1xf32> to vector<32x256xf32>
    %85 = arith.mulf %83, %84 : vector<32x256xf32>
    %86 = arith.addf %78, %85 : vector<32x256xf32>
    %c0_14 = arith.constant 0 : index
    %c0_15 = arith.constant 0 : index
    %87 = vector.load %arg6[%c0_14, %c0_15] : memref<32x1xf32, #tpu.memory_space<vmem>>, vector<32x1xf32>
    %88 = vector.broadcast %87 : vector<32x1xf32> to vector<32x256xf32>
    %89 = arith.mulf %86, %88 : vector<32x256xf32>
    %c0_16 = arith.constant 0 : index
    %c0_17 = arith.constant 0 : index
    %90 = vector.load %arg7[%c0_16, %c0_17] : memref<32x1xf32, #tpu.memory_space<vmem>>, vector<32x1xf32>
    %91 = vector.broadcast %90 : vector<32x1xf32> to vector<32x256xf32>
    %92 = arith.addf %89, %91 : vector<32x256xf32>
    %93 = arith.negf %92 : vector<32x256xf32>
    %94 = math.exp %93 : vector<32x256xf32>
    %cst_18 = arith.constant 1.000000e+00 : f32
    %95 = vector.broadcast %cst_18 : f32 to vector<32x256xf32>
    %96 = arith.addf %95, %94 : vector<32x256xf32>
    %97 = arith.divf %95, %96 : vector<32x256xf32>
    %98 = arith.mulf %92, %97 : vector<32x256xf32>
    %cst_19 = arith.constant dense<0.000000e+00> : vector<32xf32>
    %99 = vector.multi_reduction <add>, %98, %cst_19 [1] : vector<32x256xf32> to vector<32xf32>
    %100 = vector.shape_cast %99 : vector<32xf32> to vector<32x1xf32>
    %cst_20 = arith.constant 3.906250e-03 : f32
    %101 = vector.broadcast %cst_20 : f32 to vector<32x1xf32>
    %102 = arith.mulf %100, %101 : vector<32x1xf32>
    %c0_21 = arith.constant 0 : index
    %c0_22 = arith.constant 0 : index
    %103 = vector.load %arg9[%c0_21, %c0_22] : memref<32x2xf32, #tpu.memory_space<vmem>>, vector<32x2xf32>
    %104 = vector.broadcast %102 : vector<32x1xf32> to vector<32x2xf32>
    %105 = arith.mulf %103, %104 : vector<32x2xf32>
    %cst_23 = arith.constant dense<0.000000e+00> : vector<2xf32>
    %106 = vector.multi_reduction <add>, %105, %cst_23 [0] : vector<32x2xf32> to vector<2xf32>
    %107 = vector.shape_cast %106 : vector<2xf32> to vector<1x2xf32>
    %c0_24 = arith.constant 0 : index
    %c0_25 = arith.constant 0 : index
    %108 = vector.load %arg10[%c0_24, %c0_25] : memref<1x2xf32, #tpu.memory_space<vmem>>, vector<1x2xf32>
    %109 = arith.addf %107, %108 : vector<1x2xf32>
    %110 = arith.negf %109 : vector<1x2xf32>
    %111 = math.exp %110 : vector<1x2xf32>
    %cst_26 = arith.constant 1.000000e+00 : f32
    %112 = vector.broadcast %cst_26 : f32 to vector<1x2xf32>
    %113 = arith.addf %112, %111 : vector<1x2xf32>
    %114 = arith.divf %112, %113 : vector<1x2xf32>
    %115 = arith.mulf %109, %114 : vector<1x2xf32>
    %c0_27 = arith.constant 0 : index
    %c0_28 = arith.constant 0 : index
    %116 = vector.load %arg11[%c0_27, %c0_28] : memref<32x2xf32, #tpu.memory_space<vmem>>, vector<32x2xf32>
    %117 = vector.broadcast %115 : vector<1x2xf32> to vector<32x2xf32>
    %118 = arith.mulf %116, %117 : vector<32x2xf32>
    %cst_29 = arith.constant dense<0.000000e+00> : vector<32xf32>
    %119 = vector.multi_reduction <add>, %118, %cst_29 [1] : vector<32x2xf32> to vector<32xf32>
    %120 = vector.shape_cast %119 : vector<32xf32> to vector<32x1xf32>
    %c0_30 = arith.constant 0 : index
    %c0_31 = arith.constant 0 : index
    %121 = vector.load %arg12[%c0_30, %c0_31] : memref<32x1xf32, #tpu.memory_space<vmem>>, vector<32x1xf32>
    %122 = arith.addf %120, %121 : vector<32x1xf32>
    %123 = arith.negf %122 : vector<32x1xf32>
    %124 = math.exp %123 : vector<32x1xf32>
    %cst_32 = arith.constant 1.000000e+00 : f32
    %125 = vector.broadcast %cst_32 : f32 to vector<32x1xf32>
    %126 = arith.addf %125, %124 : vector<32x1xf32>
    %127 = arith.divf %125, %126 : vector<32x1xf32>
    %128 = vector.broadcast %127 : vector<32x1xf32> to vector<32x256xf32>
    %129 = arith.mulf %98, %128 : vector<32x256xf32>
    %c0_33 = arith.constant 0 : index
    %c0_34 = arith.constant 0 : index
    %130 = vector.load %arg13[%c0_33, %c0_34] : memref<8x32xf32, #tpu.memory_space<vmem>>, vector<8x32xf32>
    %cst_35 = arith.constant dense<0.000000e+00> : vector<8x256xf32>
    %131 = tpu.matmul %130, %129, %cst_35 {dimension_numbers = #tpu.dot_dimension_numbers<[1], [0], [0], [1], [0, 0, 1, 1], [], []>} : vector<8x32xf32>, vector<32x256xf32>, vector<8x256xf32> -> vector<8x256xf32>
    %c0_36 = arith.constant 0 : index
    %c0_37 = arith.constant 0 : index
    %132 = vector.load %arg14[%c0_36, %c0_37] : memref<8x1xf32, #tpu.memory_space<vmem>>, vector<8x1xf32>
    %133 = vector.broadcast %132 : vector<8x1xf32> to vector<8x256xf32>
    %134 = arith.mulf %131, %133 : vector<8x256xf32>
    %c0_38 = arith.constant 0 : index
    %c0_39 = arith.constant 0 : index
    %135 = vector.load %arg15[%c0_38, %c0_39] : memref<8x1xf32, #tpu.memory_space<vmem>>, vector<8x1xf32>
    %136 = vector.broadcast %135 : vector<8x1xf32> to vector<8x256xf32>
    %137 = arith.addf %134, %136 : vector<8x256xf32>
    %138 = arith.addf %137, %1 : vector<8x256xf32>
    %c0_40 = arith.constant 0 : index
    %c0_41 = arith.constant 0 : index
    %c0_42 = arith.constant 0 : index
    %139 = vector.load %arg16[%c0_40, %c0_41, %c0_42] : memref<1x8x256xf32, #tpu.memory_space<vmem>>, vector<1x8x256xf32>
    %140 = vector.shape_cast %139 : vector<1x8x256xf32> to vector<8x256xf32>
    %141 = vector.shape_cast %138 : vector<8x256xf32> to vector<1x8x256xf32>
    tpu.vector_store %arg16[%c0_40, %c0_41, %c0_42], %141 {strides = array<i32>} : memref<1x8x256xf32, #tpu.memory_space<vmem>>, vector<1x8x256xf32>,
    return
  }
  func.func @transform_0(%arg0: i32) -> (i32, i32, i32) {
    %c0_i32 = arith.constant 0 : i32
    %c0_i32_0 = arith.constant 0 : i32
    %c0_i32_1 = arith.constant 0 : i32
    return %arg0, %c0_i32, %c0_i32_0 : i32, i32, i32
  }
  func.func @transform_1(%arg0: i32) -> (i32, i32) {
    %c0_i32 = arith.constant 0 : i32
    %c0_i32_0 = arith.constant 0 : i32
    %c0_i32_1 = arith.constant 0 : i32
    return %c0_i32, %c0_i32_0 : i32, i32
  }
  func.func @transform_2(%arg0: i32) -> (i32, i32) {
    %c0_i32 = arith.constant 0 : i32
    %c0_i32_0 = arith.constant 0 : i32
    %c0_i32_1 = arith.constant 0 : i32
    return %c0_i32, %c0_i32_0 : i32, i32
  }
  func.func @transform_3(%arg0: i32) -> (i32, i32) {
    %c0_i32 = arith.constant 0 : i32
    %c0_i32_0 = arith.constant 0 : i32
    %c0_i32_1 = arith.constant 0 : i32
    return %c0_i32, %c0_i32_0 : i32, i32
  }
  func.func @transform_4(%arg0: i32) -> (i32, i32) {
    %c0_i32 = arith.constant 0 : i32
    %c0_i32_0 = arith.constant 0 : i32
    %c0_i32_1 = arith.constant 0 : i32
    return %c0_i32, %c0_i32_0 : i32, i32
  }
  func.func @transform_5(%arg0: i32) -> (i32, i32) {
    %c0_i32 = arith.constant 0 : i32
    %c0_i32_0 = arith.constant 0 : i32
    %c0_i32_1 = arith.constant 0 : i32
    return %c0_i32, %c0_i32_0 : i32, i32
  }
  func.func @transform_6(%arg0: i32) -> (i32, i32) {
    %c0_i32 = arith.constant 0 : i32
    %c0_i32_0 = arith.constant 0 : i32
    %c0_i32_1 = arith.constant 0 : i32
    return %c0_i32, %c0_i32_0 : i32, i32
  }
  func.func @transform_7(%arg0: i32) -> (i32, i32) {
    %c0_i32 = arith.constant 0 : i32
    %c0_i32_0 = arith.constant 0 : i32
    %c0_i32_1 = arith.constant 0 : i32
    return %c0_i32, %c0_i32_0 : i32, i32
  }
  func.func @transform_8(%arg0: i32) -> (i32, i32) {
    %c0_i32 = arith.constant 0 : i32
    %c0_i32_0 = arith.constant 0 : i32
    %c0_i32_1 = arith.constant 0 : i32
    return %c0_i32, %c0_i32_0 : i32, i32
  }
  func.func @transform_9(%arg0: i32) -> (i32, i32) {
    %c0_i32 = arith.constant 0 : i32
    %c0_i32_0 = arith.constant 0 : i32
    %c0_i32_1 = arith.constant 0 : i32
    return %c0_i32, %c0_i32_0 : i32, i32
  }
  func.func @transform_10(%arg0: i32) -> (i32, i32) {
    %c0_i32 = arith.constant 0 : i32
    %c0_i32_0 = arith.constant 0 : i32
    %c0_i32_1 = arith.constant 0 : i32
    return %c0_i32, %c0_i32_0 : i32, i32
  }
  func.func @transform_11(%arg0: i32) -> (i32, i32) {
    %c0_i32 = arith.constant 0 : i32
    %c0_i32_0 = arith.constant 0 : i32
    %c0_i32_1 = arith.constant 0 : i32
    return %c0_i32, %c0_i32_0 : i32, i32
  }
  func.func @transform_12(%arg0: i32) -> (i32, i32) {
    %c0_i32 = arith.constant 0 : i32
    %c0_i32_0 = arith.constant 0 : i32
    %c0_i32_1 = arith.constant 0 : i32
    return %c0_i32, %c0_i32_0 : i32, i32
  }
  func.func @transform_13(%arg0: i32) -> (i32, i32) {
    %c0_i32 = arith.constant 0 : i32
    %c0_i32_0 = arith.constant 0 : i32
    %c0_i32_1 = arith.constant 0 : i32
    return %c0_i32, %c0_i32_0 : i32, i32
  }
  func.func @transform_14(%arg0: i32) -> (i32, i32) {
    %c0_i32 = arith.constant 0 : i32
    %c0_i32_0 = arith.constant 0 : i32
    %c0_i32_1 = arith.constant 0 : i32
    return %c0_i32, %c0_i32_0 : i32, i32
  }
  func.func @transform_15(%arg0: i32) -> (i32, i32, i32) {
    %c0_i32 = arith.constant 0 : i32
    %c0_i32_0 = arith.constant 0 : i32
    %c0_i32_1 = arith.constant 0 : i32
    return %arg0, %c0_i32, %c0_i32_0 : i32, i32, i32
  }
}

</mosaic_0001>

<bundles_post_ra>
// kernel: tpu_custom_call.1
= control target key start
LH: loop header
LB: loop body
LE: loop exit
PB: predicated region body
PF: predicated region fallthrough
CT: control target
= control target key end

     0   :  { %20 = vsyncpa [#allocation3], 0  ;;  %s3153_s0 = inlined_call_operand.vmem [shape: f32[2,8,256], index: 0, kind: input, shape index: {}]   ;;  %s3154_s1 = inlined_call_operand.vmem [shape: f32[32,8], index: 1, kind: input, shape index: {}]   ;;  %s3155_s2 = inlined_call_operand.vmem [shape: f32[32,1], index: 2, kind: input, shape index: {}]   ;;  %s3156_s3 = inlined_call_operand.vmem [shape: f32[32,1], index: 3, kind: input, shape index: {}]   ;;  %s3157_s4 = inlined_call_operand.vmem [shape: f32[32,9], index: 4, kind: input, shape index: {}]   ;;  %s3158_s5 = inlined_call_operand.vmem [shape: f32[32,1], index: 5, kind: input, shape index: {}]   ;;  %s3159_s6 = inlined_call_operand.vmem [shape: f32[32,1], index: 6, kind: input, shape index: {}]   ;;  %s3160_s7 = inlined_call_operand.vmem [shape: f32[9,256], index: 7, kind: input, shape index: {}]   ;;  %s3161_s8 = inlined_call_operand.vmem [shape: f32[32,2], index: 8, kind: input, shape index: {}]   ;;  %s3162_s9 = inlined_call_operand.vmem [shape: f32[1,2], index: 9, kind: input, shape index: {}]   ;;  %s3163_s10 = inlined_call_operand.vmem [shape: f32[32,2], index: 10, kind: input, shape index: {}]   ;;  %s3164_s11 = inlined_call_operand.vmem [shape: f32[32,1], index: 11, kind: input, shape index: {}]   ;;  %s3165_s12 = inlined_call_operand.vmem [shape: f32[8,32], index: 12, kind: input, shape index: {}]   ;;  %s3166_s13 = inlined_call_operand.vmem [shape: f32[8,1], index: 13, kind: input, shape index: {}]   ;;  %s3167_s14 = inlined_call_operand.vmem [shape: f32[8,1], index: 14, kind: input, shape index: {}]   ;;  %s3168_s15 = inlined_call_operand.hbm [shape: f32[2,8,256], index: 15, kind: output, shape index: {}]  }
   0x1   :  { %22 = vsyncpa [#allocation3 + $0x1], 0  ;;  %s2148_s18 = smov 0   ;;  %s2150_s19 = smov 0  }
   0x2   :  { %s2152_s20 = smov 0   ;;  %s2154_s21 = smov 0  }
   0x3 LB: > { %3200 = sst [smem:[#allocation5_spill]] %s2035_s18  ;;  %s2169_s22 = sadd.s32 4294967295, %s2047_s21   ;;  %s2047_s21 = sphi %s2154_s21, %s3260_s21   ;;  %s2043_s20 = sphi %s2152_s20, %s3262_s20   ;;  %s2039_s19 = sphi %s2150_s19, %s3264_s19   ;;  %s2035_s18 = sphi %s2148_s18, %s3263_s18  }
   0x4   : > { %3201 = sst [smem:[#allocation6_spill]] %s2043_s20  ;;  %s1772_s23 = sadd.s32 4294967294, %s2047_s21  }
   0x5   : > { %s2173_s24 = sadd.s32 1, %s2047_s21   ;;  %s355_s25 = sadd.s32 1, %s2043_s20 }
   0x6   : > { %3202 = sst [smem:[#allocation7_spill]] %s2173_s24  ;;  %s352_s26 = ssub.s32 %s2047_s21, %s2173_s24 }
   0x7   : > { %p365_p0 = scmp.ne.s32.totalorder %s2043_s20, %s2039_s19  ;;  %p353_p1 = scmp.eq.s32.totalorder %s352_s26, 0 }
   0x8   : > { %p366_p2 = scmp.eq.s32.totalorder %s2169_s22, 1  ;;  %p371_p3 = scmp.ne.s32.totalorder %s2039_s19, %s2035_s18 }
   0x9   : > { %p372_p4 = scmp.eq.s32.totalorder %s1772_s23, 1  ;;  %p1775_p7 = scmp.ge.s32.totalorder %s2047_s21, 1 }
   0xa   : > { %s2184_s27 = scalar_select %p353_p1, %s2043_s20, %s355_s25  }
   0xb   : > { %p2186_p5 = por %p366_p2, %p365_p0  ;;  %p2190_p6 = por %p372_p4, %p371_p3 }
   0xc   : > { %3203 = sst [smem:[#allocation8_spill]] %s2184_s27  ;;  %p440_p8 = scmp.lt.s32.totalorder %s2047_s21, 3 }
   0xd   : > { %s3205_s29 = scalar_select %p2190_p6, 1, 0 }
   0xe   : > { %p441_p9 = pnand %p1775_p7, %p440_p8 }
   0xf   : > { %3206 = sst [smem:[#allocation9_spill]] %s3205_s29 }
  0x10   : > { %444 = sbr.rel (%p441_p9) target bundleno = 1339 (0x53b), region = 80 }
  0x17   : > { %v2199_v0 = vld [vmem:[%s3157_s4] sm:$0xff]  ;;  %p488_p10 = scmp.lt.s32.totalorder %s2169_s22, 1  ;;  %v2049_v1 = vmov 1   ;;  %v2050_v2 = vmov 0.0   ;;  %v2207_v3 = vld [vmem:[%s3157_s4 + $0x10] sm:$0xff]  ;;  %v2051_v5 = vmov 0  }
  0x18   : > { %1880 = vset.pattern.permute.xlu0 %v2049_v1  ;;  %576 = vmatprep.mubr.f32.mxu0 %v2050_v2  ;;  %v603_v4 = vld [vmem:[%s3155_s2 + $0x10] sm:$0xff]  ;;  %v495_v6 = vld [vmem:[%s3154_s1] sm:$0xff]  ;;  %vm499_vm0 = vcmask 64512   ;;  %v2230_v10 = vld [vmem:[%s3157_s4 + $0x18] sm:$0xff]  ;;  %v2052_v14 = vmov 2   ;;  %v2053_v18 = vmov 3  }
  0x19   : > { %850 = vperm.xlu0 %1880, %v2199_v0   ;;  %s489_s17 = scalar_select %p488_p10, %s2169_s22, 1  ;;  %1671 = vmatprep.mubr.f32.mxu1 %v2050_v2  ;;  %v633_v9 = vld [vmem:[%s3156_s3] sm:$0xff]  ;;  %v496_v11 = vld [vmem:[%s3154_s1 + $0x8] sm:$0xff]  ;;  %v604_v12 = vld [vmem:[%s3155_s2 + $0x18] sm:$0xff]  ;;  %v2054_v19 = vmov 4   ;;  %v2055_v20 = vmov 5  }
  0x1a   : > { %1879 = vset.pattern.permute.xlu1 %v2051_v5  ;;  %v722_v13 = vld [vmem:[%s3157_s4 + $0x8] sm:$0xff]  ;;  %v497_v15 = vld [vmem:[%s3154_s1 + $0x10] sm:$0xff]  ;;  %v636_v16 = vld [vmem:[%s3156_s3 + $0x18] sm:$0xff]  ;;  %v2056_v21 = vmov 6   ;;  %v2057_v22 = vmov 8   ;;  %v2058_v23 = vmov 7  }
  0x1b   : > { %s1812_s16 = sshll.u32 %s489_s17, 4  ;;  %617 = vperm.xlu1 %1879, %v603_v4   ;;  %v498_v17 = vld [vmem:[%s3154_s1 + $0x18] sm:$0xff]  ;;  %v601_v24 = vld [vmem:[%s3155_s2] sm:$0xff]  ;;  %v602_v25 = vld [vmem:[%s3155_s2 + $0x8] sm:$0xff]  ;;  %s2059_s25 = smov 15   ;;  %vm1495_vm9 = vcmask 15360  }
  0x1c   : > { %s2216_s24 = scalar_lea.vmem %s3153_s0, %s1812_s16  ;;  %v634_v26 = vld [vmem:[%s3156_s3 + $0x8] sm:$0xff]  ;;  %v635_v27 = vld [vmem:[%s3156_s3 + $0x10] sm:$0xff]  ;;  %v1351_v28 = vld [vmem:[%s3158_s5] sm:$0xff]  ;;  %s2060_s26 = smov 17   ;;  %vm1603_vm10 = vcmask 261120  }
  0x1d   : > { %858 = vperm.xlu0 %1880, %v2207_v3   ;;  %v494_v7 = vld [vmem:[%s2216_s24 + $0x8] sm:$0xff]  ;;  %v493_v8 = vld [vmem:[%s2216_s24] sm:$0xff]  ;;  %v1354_v31 = vld [vmem:[%s3158_s5 + $0x18] sm:$0xff]  ;;  %s2061_s30 = smov 1   ;;  %s2062_s16 = smov 16  }
  0x1e   : > { %512 = vmatprep.subr.mxu0 %v494_v7  ;;  %v1383_v29 = vld [vmem:[%s3159_s6] sm:$0xff]  ;;  %v1352_v30 = vld [vmem:[%s3158_s5 + $0x8] sm:$0xff]  ;;  %v1353_v32 = vld [vmem:[%s3158_s5 + $0x10] sm:$0xff]  ;;  %s2063_s17 = smov 127   ;;  %s3178_s23 = smov 111  }
  0x1f   : > { %513 = vmatpush1.msra.mxu0 %v493_v8  ;;  %639 = vperm.xlu1 %1879, %v633_v9   ;;  %v1384_v33 = vld [vmem:[%s3159_s6 + $0x8] sm:$0xff]  ;;  %s2065_s20 = smov 113   ;;  %s2066_s27 = smov 112  }
  0x20   : > { %1779 = vmatmul.mubr.msk.f32.vlgmr.msra.gmra.mrb[0].mxu0 %vm499_vm0, %v495_v6  ;;  %s485_s29 = sand.u32 1, %s2039_s19  }
  0x21   : > { %862 = vperm.xlu0 %1880, %v2230_v10   ;;  %582 = vmatprep.mubr.f32.mxu0 %v2050_v2 }
  0x23   : > { %622 = vperm.xlu1 %1879, %v604_v12  }
  0x24   : > { %1780 = vmatmul.mubr.msk.f32.gmra.mrb[2].mxu0 %vm499_vm0, %v496_v11 }
  0x25   : > { %1884 = vset.pattern.permute.xlu0 %v2052_v14  ;;  %588 = vmatprep.mubr.f32.mxu0 %v2050_v2 }
  0x26   : > { %927 = vperm.xlu0 %1884, %v722_v13  }
  0x27   : > { %654 = vperm.xlu1 %1879, %v636_v16  }
  0x28   : > { %1781 = vmatmul.mubr.msk.f32.gmra.mrb[4].mxu0 %vm499_vm0, %v497_v15 }
  0x29   : > { %594 = vmatprep.mubr.f32.mxu0 %v2050_v2 }
  0x2a   : > { %935 = vperm.xlu0 %1884, %v2230_v10  }
  0x2b   : > { %779 = vperm.xlu1 %1879, %v722_v13  }
  0x2c   : > { %1782 = vmatmul.mubr.msk.f32.gmra.mrb[6].mxu0 %vm499_vm0, %v498_v17 }
  0x2e   : > { %1886 = vset.pattern.permute.xlu0 %v2053_v18 }
  0x2f   : > { %1000 = vperm.xlu0 %1886, %v722_v13   ;;  %1881 = vset.pattern.permute.xlu1 %v2049_v1 }
  0x30   : > { %854 = vperm.xlu1 %1881, %v722_v13  }
  0x33   : > { %1008 = vperm.xlu0 %1886, %v2230_v10  }
  0x34   : > { %1882 = vset.pattern.permute.xlu1 %v2051_v5 }
  0x35   : > { %784 = vperm.xlu1 %1882, %v2207_v3  }
  0x37   : > { %1888 = vset.pattern.permute.xlu0 %v2054_v19 }
  0x38   : > { %1032 = vperm.xlu0 %1888, %v722_v13  }
  0x39   : > { %1883 = vset.pattern.permute.xlu1 %v2052_v14 }
  0x3a   : > { %923 = vperm.xlu1 %1883, %v2199_v0  }
  0x3c   : > { %1040 = vperm.xlu0 %1888, %v2230_v10  }
  0x3e   : > { %931 = vperm.xlu1 %1883, %v2207_v3  }
  0x40   : > { %1890 = vset.pattern.permute.xlu0 %v2055_v20 }
  0x41   : > { %1105 = vperm.xlu0 %1890, %v722_v13  }
  0x42   : > { %1885 = vset.pattern.permute.xlu1 %v2053_v18 }
  0x43   : > { %996 = vperm.xlu1 %1885, %v2199_v0  }
  0x45   : > { %1113 = vperm.xlu0 %1890, %v2230_v10  }
  0x47   : > { %1004 = vperm.xlu1 %1885, %v2207_v3  }
  0x49   : > { %1892 = vset.pattern.permute.xlu0 %v2056_v21 }
  0x4a   : > { %1178 = vperm.xlu0 %1892, %v722_v13  }
  0x4b   : > { %1887 = vset.pattern.permute.xlu1 %v2054_v19 }
  0x4c   : > { %1028 = vperm.xlu1 %1887, %v2199_v0  }
  0x4e   : > { %1186 = vperm.xlu0 %1892, %v2230_v10  }
  0x50   : > { %1036 = vperm.xlu1 %1887, %v2207_v3  }
  0x52   : > { %1895 = vset.pattern.permute.xlu0 %v2057_v22 }
  0x53   : > { %1324 = vperm.xlu0 %1895, %v722_v13  }
  0x54   : > { %1889 = vset.pattern.permute.xlu1 %v2055_v20 }
  0x55   : > { %1101 = vperm.xlu1 %1889, %v2199_v0  }
  0x57   : > { %1896 = vset.pattern.permute.xlu0 %v2058_v23 }
  0x58   : > { %1251 = vperm.xlu0 %1896, %v722_v13  }
  0x59   : > { %1109 = vperm.xlu1 %1889, %v2207_v3  }
  0x5c   : > { %1259 = vperm.xlu0 %1896, %v2230_v10  }
  0x5d   : > { %1891 = vset.pattern.permute.xlu1 %v2056_v21 }
  0x5e   : > { %1174 = vperm.xlu1 %1891, %v2199_v0  }
  0x60   : > { %1897 = vset.pattern.permute.xlu0 %v2051_v5 }
  0x61   : > { %607 = vperm.xlu0 %1897, %v601_v24  }
  0x62   : > { %1182 = vperm.xlu1 %1891, %v2207_v3  }
  0x65   : > { %612 = vperm.xlu0 %1897, %v602_v25  }
  0x66   : > { %1893 = vset.pattern.permute.xlu1 %v2058_v23 }
  0x67   : > { %1247 = vperm.xlu1 %1893, %v2199_v0  }
  0x69   : > { %644 = vperm.xlu0 %1897, %v634_v26  }
  0x6b   : > { %1255 = vperm.xlu1 %1893, %v2207_v3  }
  0x6d   : > { %649 = vperm.xlu0 %1897, %v635_v27  }
  0x6f   : > { %1894 = vset.pattern.permute.xlu1 %v2057_v22 }
  0x70   : > { %1320 = vperm.xlu1 %1894, %v2199_v0  }
  0x71   : > { %774 = vperm.xlu0 %1897, %v2199_v0  }
  0x74   : > { %1328 = vperm.xlu1 %1894, %v2207_v3  }
  0x75   : > { %789 = vperm.xlu0 %1897, %v2230_v10  }
  0x78   : > { %1332 = vperm.xlu1 %1894, %v2230_v10  }
  0x79   : > { %1357 = vperm.xlu0 %1897, %v1351_v28  }
  0x7c   : > { %1898 = vset.pattern.permute.xlu1 %v2051_v5 }
  0x7d   : > { %1389 = vperm.xlu0 %1897, %v1383_v29   ;;  %1362 = vperm.xlu1 %1898, %v1352_v30  }
  0x81   : > { %1372 = vperm.xlu0 %1897, %v1354_v31   ;;  %1367 = vperm.xlu1 %1898, %v1353_v32  }
  0x85   : > { %1394 = vperm.xlu1 %1898, %v1384_v33  }
  0x98   : > { %v2312_v34 = vpop.permute.xlu0 %850 }
  0x9a   : > { %v2344_v51 = vpop.permute.xlu1 %617 }
  0x9c   : > { %v2314_v35 = vpop.permute.xlu0 %858 }
  0x9d   : > { %3207 = vst [vmem:[#allocation10_spill] sm:$0xff] %v2314_v35 }
  0x9e   : > { %v640_v56 = vpop.permute.xlu1 %639 }
  0xa0   : > { %v2316_v36 = vpop.permute.xlu0 %862 }
  0xa1   : > { %3208 = vst [vmem:[#allocation11_spill] sm:$0xff] %v2316_v36 }
  0xa2   : > { %v2350_v8 = vpop.permute.xlu1 %622 }
  0xa5   : > { %v2318_v37 = vpop.permute.xlu0 %927 }
  0xa6   : > { %v2352_v11 = vpop.permute.xlu1 %654 }
  0xa9   : > { %v2320_v38 = vpop.permute.xlu0 %935 }
  0xaa   : > { %3209 = vst [vmem:[#allocation12_spill] sm:$0xff] %v2320_v38  ;;  %v2354_v15 = vpop.permute.xlu1 %779 }
  0xae   : > { %v2322_v39 = vpop.permute.xlu0 %1000 }
  0xaf   : > { %v2358_v19 = vpop.permute.xlu1 %854 }
  0xb2   : > { %v2324_v40 = vpop.permute.xlu0 %1008 }
  0xb3   : > { %3210 = vst [vmem:[#allocation13_spill] sm:$0xff] %v2324_v40 }
  0xb4   : > { %v2364_v22 = vpop.permute.xlu1 %784 }
  0xb5   : > { %3215 = vst [vmem:[#allocation18_spill] sm:$0xff] %v2364_v22 }
  0xb7   : > { %v2326_v41 = vpop.permute.xlu0 %1032 }
  0xb9   : > { %v2376_v26 = vpop.permute.xlu1 %923 }
  0xbb   : > { %v2328_v42 = vpop.permute.xlu0 %1040 }
  0xbc   : > { %3211 = vst [vmem:[#allocation14_spill] sm:$0xff] %v2328_v42 }
  0xbd   : > { %v2385_v32 = vpop.permute.xlu1 %931 }
  0xbe   : > { %3216 = vst [vmem:[#allocation19_spill] sm:$0xff] %v2385_v32 }
  0xc0   : > { %v2330_v43 = vpop.permute.xlu0 %1105 }
  0xc4   : > { %v2332_v44 = vpop.permute.xlu0 %1113 }
  0xc5   : > { %3212 = vst [vmem:[#allocation15_spill] sm:$0xff] %v2332_v44 }
  0xc9   : > { %v2334_v45 = vpop.permute.xlu0 %1178 }
  0xcd   : > { %v2336_v46 = vpop.permute.xlu0 %1186 }
  0xce   : > { %3213 = vst [vmem:[#allocation16_spill] sm:$0xff] %v2336_v46  ;;  %v2581_v46 = vld [vmem:[%s3160_s7 + $0x8] sm:$0xff] }
  0xd2   : > { %v2338_v47 = vpop.permute.xlu0 %1324 }
  0xd7   : > { %v2340_v48 = vpop.permute.xlu0 %1251 }
  0xdb   : > { %v2342_v49 = vpop.permute.xlu0 %1259 }
  0xdc   : > { %3214 = vst [vmem:[#allocation17_spill] sm:$0xff] %v2342_v49  ;;  %v2576_v49 = vld [vmem:[%s3160_s7] sm:$0xff] }
  0xe0   : > { %v608_v50 = vpop.permute.xlu0 %607 }
  0xe4   : > { %v613_v55 = vpop.permute.xlu0 %612 }
  0xe8   : > { %v645_v0 = vpop.permute.xlu0 %644 }
  0xec   : > { %v650_v30 = vpop.permute.xlu0 %649 }
  0xf3   : > { %v578_v52 = vpop.f32.mrb[0].mxu0 }
  0xf4   : > { %v625_v53 = vmul.f32 %v608_v50, %v578_v52  ;;  %v580_v54 = vpop.f32.mrb[1].mxu0  ;;  %v2395_v52 = vpop.permute.xlu1 %996 }
  0xf5   : > { %v626_v57 = vmul.f32 %v608_v50, %v580_v54 }
  0xf6   : > { %v657_v58 = vadd.f32 %v640_v56, %v625_v53 }
  0xf7   : > { %v584_v59 = vpop.f32.mrb[2].mxu0  ;;  %v658_v61 = vadd.f32 %v640_v56, %v626_v57 }
  0xf8   : > { %v1783_v60 = vmul.f32 -1.442695, %v657_v58  ;;  %v627_v62 = vmul.f32 %v613_v55, %v584_v59  ;;  %v586_v63 = vpop.f32.mrb[3].mxu0 }
  0xf9   : > { %v1784_v2 = vmul.f32 -1.442695, %v658_v61  ;;  %v628_v20 = vmul.f32 %v613_v55, %v586_v63  ;;  %v2402_v55 = vpop.permute.xlu1 %1004 }
  0xfa   : > { %1899 = vpow2.f32 %v1783_v60  ;;  %v659_v3 = vadd.f32 %v645_v0, %v627_v62  ;;  %3217 = vst [vmem:[#allocation20_spill] sm:$0xff] %v2402_v55 }
  0xfb   : > { %v590_v1 = vpop.f32.mrb[4].mxu0  ;;  %1901 = vpow2.f32 %v1784_v2  ;;  %v660_v21 = vadd.f32 %v645_v0, %v628_v20 }
  0xfc   : > { %v592_v4 = vpop.f32.mrb[5].mxu0  ;;  %v1785_v6 = vmul.f32 -1.442695, %v659_v3  ;;  %v629_v28 = vmul.f32 %v2344_v51, %v590_v1 }
  0xfd   : > { %v1786_v24 = vmul.f32 -1.442695, %v660_v21  ;;  %v630_v54 = vmul.f32 %v2344_v51, %v592_v4 }
  0xfe   : > { %1903 = vpow2.f32 %v1785_v6  ;;  %v661_v31 = vadd.f32 %v650_v30, %v629_v28 }
  0xff   : > { %v2346_v5 = vpop.f32.mrb[6].mxu0  ;;  %v662_v56 = vadd.f32 %v650_v30, %v630_v54 }
 0x100   : > { %v2348_v7 = vpop.f32.mrb[7].mxu0  ;;  %v1787_v33 = vmul.f32 -1.442695, %v661_v31  ;;  %v631_v59 = vmul.f32 %v2350_v8, %v2346_v5 }
 0x101   : > { %v1788_v51 = vmul.f32 -1.442695, %v662_v56 }
 0x102   : > { %v663_v63 = vadd.f32 %v2352_v11, %v631_v59 }
 0x104   : > { %v1900_v9 = vpop.eup %1899  ;;  %v1789_v2 = vmul.f32 -1.442695, %v663_v63 }
 0x105   : > { %v689_v10 = vadd.f32 1.0, %v1900_v9  ;;  %v1902_v12 = vpop.eup %1901 }
 0x106   : > { %v690_v13 = vadd.f32 1.0, %v1902_v12 }
 0x107   : > { %1905 = vrcp.f32 %v689_v10 }
 0x108   : > { %v1904_v14 = vpop.eup %1903  ;;  %1907 = vrcp.f32 %v690_v13 }
 0x109   : > { %v691_v17 = vadd.f32 1.0, %v1904_v14 }
 0x10b   : > { %1909 = vrcp.f32 %v691_v17 }
 0x10c   : > { %1911 = vpow2.f32 %v1786_v24 }
 0x10d   : > { %1913 = vpow2.f32 %v1787_v33 }
 0x111   : > { %v1906_v16 = vpop.eup %1905 }
 0x112   : > { %v2356_v18 = vmul.f32 %v1906_v16, %v657_v58  ;;  %v1908_v23 = vpop.eup %1907  ;;  %v2412_v58 = vpop.permute.xlu1 %1028 }
 0x113   : > { %v2374_v25 = vmul.f32 %v1908_v23, %v658_v61 }
 0x114   : > { %881 = vrot.lane.b32.xlu0 %v2356_v18, %s2059_s25  ;;  %729 = vrot.lane.b32.xlu1 %v2356_v18, %s2060_s26  ;;  %v1043_v35 = vmul.f32 %v2412_v58, %v2356_v18 }
 0x115   : > { %v1910_v27 = vpop.eup %1909 }
 0x116   : > { %v2383_v29 = vmul.f32 %v1910_v27, %v659_v3  ;;  %v1912_v50 = vpop.eup %1911  ;;  %v2420_v61 = vpop.permute.xlu1 %1036  ;;  %v632_v3 = vmul.f32 %v2350_v8, %v2348_v7 }
 0x117   : > { %v692_v53 = vadd.f32 1.0, %v1912_v50  ;;  %v1914_v57 = vpop.eup %1913  ;;  %3218 = vst [vmem:[#allocation21_spill] sm:$0xff] %v2420_v61  ;;  %v2498_v50 = vpop.permute.xlu0 %774 }
 0x118   : > { %954 = vrot.lane.b32.xlu0 %v2356_v18, %s2061_s30  ;;  %808 = vrot.lane.b32.xlu1 %v2356_v18, %s2062_s16  ;;  %v693_v60 = vadd.f32 1.0, %v1914_v57  ;;  %v664_v4 = vadd.f32 %v2352_v11, %v632_v3  ;;  %v1386_v57 = vld [vmem:[%s3159_s6 + $0x18] sm:$0xff] }
 0x119   : > { %1915 = vrcp.f32 %v692_v53 }
 0x11a   : > { %1917 = vpow2.f32 %v1788_v51  ;;  %v2429_v1 = vpop.permute.xlu1 %1101  ;;  %v1790_v7 = vmul.f32 -1.442695, %v664_v4 }
 0x11b   : > { %1919 = vrcp.f32 %v693_v60 }
 0x11c   : > { %1059 = vrot.lane.b32.xlu0 %v2356_v18, %s2063_s17  ;;  %1278 = vrot.lane.b32.xlu1 %v2356_v18, %s3178_s23  ;;  %1921 = vpow2.f32 %v1789_v2 }
 0x11d   : > { %1923 = vpow2.f32 %v1790_v7 }
 0x11e   : > { %v2442_v5 = vpop.permute.xlu1 %1109 }
 0x11f   : > { %3219 = vst [vmem:[#allocation22_spill] sm:$0xff] %v2442_v5 }
 0x120   : > { %1132 = vrot.lane.b32.xlu0 %v2356_v18, %s2065_s20  ;;  %1286 = vrot.lane.b32.xlu1 %v2374_v25, %s3178_s23 }
 0x122   : > { %v2450_v11 = vpop.permute.xlu1 %1174 }
 0x123   : > { %v1916_v62 = vpop.eup %1915 }
 0x124   : > { %1205 = vrot.lane.b32.xlu0 %v2356_v18, %s2066_s27  ;;  %731 = vrot.lane.b32.xlu1 %v2383_v29, %s2060_s26  ;;  %v2427_v0 = vmul.f32 %v1916_v62, %v660_v21  ;;  %v1918_v6 = vpop.eup %1917 }
 0x125   : > { %v1920_v9 = vpop.eup %1919  ;;  %v694_v8 = vadd.f32 1.0, %v1918_v6 }
 0x126   : > { %v2448_v10 = vmul.f32 %v1920_v9, %v661_v31  ;;  %v1922_v12 = vpop.eup %1921  ;;  %v2460_v13 = vpop.permute.xlu1 %1182 }
 0x127   : > { %1925 = vrcp.f32 %v694_v8  ;;  %3221 = vst [vmem:[#allocation24_spill] sm:$0xff] %v2460_v13  ;;  %v695_v14 = vadd.f32 1.0, %v1922_v12  ;;  %v1924_v16 = vpop.eup %1923 }
 0x128   : > { %737 = vrot.lane.b32.xlu0 %v2374_v25, %s2060_s26  ;;  %810 = vrot.lane.b32.xlu1 %v2383_v29, %s2062_s16  ;;  %3220 = vst [vmem:[#allocation23_spill] sm:$0xff] %v2448_v10  ;;  %v696_v21 = vadd.f32 1.0, %v1924_v16  ;;  %v745_v16 = vlaneseq }
 0x129   : > { %1927 = vrcp.f32 %v695_v14 }
 0x12a   : > { %v2466_v17 = vpop.permute.xlu1 %1247  ;;  %1929 = vrcp.f32 %v696_v21 }
 0x12c   : > { %816 = vrot.lane.b32.xlu0 %v2374_v25, %s2062_s16  ;;  %883 = vrot.lane.b32.xlu1 %v2383_v29, %s2059_s25 }
 0x12e   : > { %v2478_v24 = vpop.permute.xlu1 %1255 }
 0x12f   : > { %3223 = vst [vmem:[#allocation26_spill] sm:$0xff] %v2478_v24 }
 0x130   : > { %889 = vrot.lane.b32.xlu0 %v2374_v25, %s2059_s25  ;;  %956 = vrot.lane.b32.xlu1 %v2383_v29, %s2061_s30 }
 0x131   : > { %v1926_v20 = vpop.eup %1925 }
 0x132   : > { %v2472_v23 = vmul.f32 %v1926_v20, %v662_v56  ;;  %v2486_v30 = vpop.permute.xlu1 %1320  ;;  %v2508_v56 = vpop.permute.xlu0 %789 }
 0x133   : > { %v1928_v27 = vpop.eup %1927  ;;  %3227 = vst [vmem:[#allocation30_spill] sm:$0xff] %v2508_v56 }
 0x134   : > { %962 = vrot.lane.b32.xlu0 %v2374_v25, %s2061_s30  ;;  %1061 = vrot.lane.b32.xlu1 %v2383_v29, %s2063_s17  ;;  %3222 = vst [vmem:[#allocation25_spill] sm:$0xff] %v2472_v23  ;;  %v2484_v28 = vmul.f32 %v1928_v27, %v663_v63  ;;  %v1930_v31 = vpop.eup %1929  ;;  %v2561_v27 = vshrl.u32 %v745_v16, 7 }
 0x135   : > { %v2500_v53 = vmul.f32 %v1930_v31, %v664_v4 }
 0x136   : > { %3224 = vst [vmem:[#allocation27_spill] sm:$0xff] %v2484_v28  ;;  %v2496_v33 = vpop.permute.xlu1 %1328  ;;  %v2521_v59 = vpop.permute.xlu0 %1357  ;;  %v835_v31 = vsub.s32 1, %v2561_v27  ;;  %v908_v40 = vsub.s32 2, %v2561_v27  ;;  %v981_v36 = vsub.s32 3, %v2561_v27 }
 0x137   : > { %3225 = vst [vmem:[#allocation28_spill] sm:$0xff] %v2496_v33 }
 0x138   : > { %1067 = vrot.lane.b32.xlu0 %v2374_v25, %s2063_s17  ;;  %1134 = vrot.lane.b32.xlu1 %v2383_v29, %s2065_s20  ;;  %v2591_v44 = vrot.slane %v2581_v46, %v835_v31  ;;  %v2622_v61 = vrot.slane %v2581_v46, %v908_v40 }
 0x13a   : > { %v2506_v54 = vpop.permute.xlu1 %1332  ;;  %v2527_v62 = vpop.permute.xlu0 %1389 }
 0x13b   : > { %3226 = vst [vmem:[#allocation29_spill] sm:$0xff] %v2506_v54 }
 0x13c   : > { %1140 = vrot.lane.b32.xlu0 %v2374_v25, %s2065_s20  ;;  %1207 = vrot.lane.b32.xlu1 %v2383_v29, %s2066_s27 }
 0x13e   : > { %v2519_v51 = vpop.permute.xlu1 %1362  ;;  %v2535_v2 = vpop.permute.xlu0 %1372 }
 0x13f   : > { %3230 = vst [vmem:[#allocation33_spill] sm:$0xff] %v2535_v2 }
 0x140   : > { %1213 = vrot.lane.b32.xlu0 %v2374_v25, %s2066_s27  ;;  %739 = vrot.lane.b32.xlu1 %v2427_v0, %s2060_s26 }
 0x142   : > { %v2525_v60 = vpop.permute.xlu1 %1367 }
 0x143   : > { %3228 = vst [vmem:[#allocation31_spill] sm:$0xff] %v2525_v60  ;;  %v2569_v60 = vsub.s32 0, %v2561_v27 }
 0x144   : > { %1280 = vrot.lane.b32.xlu0 %v2383_v29, %s3178_s23  ;;  %818 = vrot.lane.b32.xlu1 %v2427_v0, %s2062_s16 }
 0x145   : > { %3231 = vst [vmem:[#allocation34_spill] sm:$0xff] %v2569_v60  ;;  %v2596_v42 = vrot.slane %v2576_v49, %v2569_v60 }
 0x146   : > { %v2533_v63 = vpop.permute.xlu1 %1394 }
 0x147   : > { %3229 = vst [vmem:[#allocation32_spill] sm:$0xff] %v2533_v63 }
 0x148   : > { %1288 = vrot.lane.b32.xlu0 %v2427_v0, %s3178_s23  ;;  %891 = vrot.lane.b32.xlu1 %v2427_v0, %s2059_s25 }
 0x14c   : > { %964 = vrot.lane.b32.xlu1 %v2427_v0, %s2061_s30  ;;  %812 = vrot.lane.b32.xlu0 %v2448_v10, %s2062_s16 }
 0x150   : > { %1069 = vrot.lane.b32.xlu1 %v2427_v0, %s2063_s17  ;;  %885 = vrot.lane.b32.xlu0 %v2448_v10, %s2059_s25 }
 0x154   : > { %1142 = vrot.lane.b32.xlu1 %v2427_v0, %s2065_s20  ;;  %958 = vrot.lane.b32.xlu0 %v2448_v10, %s2061_s30 }
 0x158   : > { %1215 = vrot.lane.b32.xlu1 %v2427_v0, %s2066_s27  ;;  %1136 = vrot.lane.b32.xlu0 %v2448_v10, %s2065_s20 }
 0x15c   : > { %733 = vrot.lane.b32.xlu1 %v2448_v10, %s2060_s26  ;;  %1217 = vrot.lane.b32.xlu0 %v2472_v23, %s2066_s27 }
 0x160   : > { %1063 = vrot.lane.b32.xlu1 %v2448_v10, %s2063_s17  ;;  %1290 = vrot.lane.b32.xlu0 %v2472_v23, %s3178_s23 }
 0x164   : > { %1209 = vrot.lane.b32.xlu1 %v2448_v10, %s2066_s27  ;;  %814 = vrot.lane.b32.xlu0 %v2484_v28, %s2062_s16 }
 0x168   : > { %1282 = vrot.lane.b32.xlu1 %v2448_v10, %s3178_s23  ;;  %1284 = vrot.lane.b32.xlu0 %v2484_v28, %s3178_s23 }
 0x16c   : > { %741 = vrot.lane.b32.xlu1 %v2472_v23, %s2060_s26  ;;  %1146 = vrot.lane.b32.xlu0 %v2500_v53, %s2065_s20 }
 0x170   : > { %820 = vrot.lane.b32.xlu1 %v2472_v23, %s2062_s16  ;;  %1219 = vrot.lane.b32.xlu0 %v2500_v53, %s2066_s27 }
 0x174   : > { %893 = vrot.lane.b32.xlu1 %v2472_v23, %s2059_s25  ;;  %1404 = vperm.xlu0 %1897, %v1386_v57   ;;  %v2566_v57 = vand.u32 127, %v745_v16  ;;  %v2588_v16 = vrot.slane %v2576_v49, %v835_v31 }
 0x176   : > { %vm747_vm1 = vcmp.lt.s32.totalorder %v2566_v57, 17  ;;  %vm824_vm2 = vcmp.lt.s32.totalorder %v2566_v57, 16  ;;  %vm897_vm3 = vcmp.lt.s32.totalorder %v2566_v57, 15  ;;  %vm970_vm4 = vcmp.lt.s32.totalorder %v2566_v57, 1 }
 0x177   : > { %vm1075_vm5 = vcmp.lt.s32.totalorder %v2566_v57, 127  ;;  %vm1294_vm6 = vcmp.lt.s32.totalorder %v2566_v57, 111  ;;  %vm1148_vm7 = vcmp.lt.s32.totalorder %v2566_v57, 113  ;;  %vm1221_vm8 = vcmp.lt.s32.totalorder %v2566_v57, 112 }
 0x178   : > { %966 = vrot.lane.b32.xlu1 %v2472_v23, %s2061_s30 }
 0x17c   : > { %1071 = vrot.lane.b32.xlu1 %v2472_v23, %s2063_s17 }
 0x180   : > { %1144 = vrot.lane.b32.xlu1 %v2472_v23, %s2065_s20  ;;  %v2619_v23 = vrot.slane %v2576_v49, %v908_v40  ;;  %v2637_v40 = vrot.slane %v2581_v46, %v981_v36 }
 0x184   : > { %735 = vrot.lane.b32.xlu1 %v2484_v28, %s2060_s26 }
 0x186   : > { %v882_v3 = vpop.permute.xlu0 %881  ;;  %v730_v4 = vpop.permute.xlu1 %729 }
 0x188   : > { %887 = vrot.lane.b32.xlu1 %v2484_v28, %s2059_s25 }
 0x18a   : > { %v2541_v6 = vpop.permute.xlu0 %954  ;;  %v809_v9 = vpop.permute.xlu1 %808 }
 0x18c   : > { %960 = vrot.lane.b32.xlu1 %v2484_v28, %s2061_s30 }
 0x18e   : > { %v2545_v7 = vpop.permute.xlu0 %1059  ;;  %v2547_v8 = vpop.permute.xlu1 %1278 }
 0x190   : > { %1065 = vrot.lane.b32.xlu1 %v2484_v28, %s2063_s17 }
 0x192   : > { %v2551_v12 = vpop.permute.xlu0 %1132  ;;  %v2553_v14 = vpop.permute.xlu1 %1286 }
 0x194   : > { %1138 = vrot.lane.b32.xlu1 %v2484_v28, %s2065_s20 }
 0x196   : > { %v2557_v20 = vpop.permute.xlu0 %1205  ;;  %v2559_v21 = vpop.permute.xlu1 %731 }
 0x198   : > { %1211 = vrot.lane.b32.xlu1 %v2484_v28, %s2066_s27  ;;  %v2600_v28 = vrot.slane %v2581_v46, %v2569_v60 }
 0x19a   : > { %v738_v2 = vpop.permute.xlu0 %737  ;;  %v2571_v54 = vpop.permute.xlu1 %810 }
 0x19b   : > { %v748_v31 = vsel %vm747_vm1, %v730_v4, %v738_v2  ;;  %v752_v33 = vsel %vm747_vm1, %v738_v2, %v730_v4 }
 0x19c   : > { %743 = vrot.lane.b32.xlu1 %v2500_v53, %s2060_s26  ;;  %v764_v2 = vmul.f32 %v2596_v42, %v752_v33  ;;  %v765_v4 = vmul.f32 %v2600_v28, %v748_v31  ;;  %v1086_v33 = vsub.s32 5, %v2561_v27  ;;  %s1813_s26 = sshll.u32 %s2169_s22, 8  ;;  %s1699_s22 = scalar_lea.sflag [#allocation3], %s485_s29 }
 0x19d   : > { %s3111_s27 = scalar_lea.hbm %s3168_s15, %s1813_s26 }
 0x19e   : > { %v817_v38 = vpop.permute.xlu0 %816  ;;  %v2602_v56 = vpop.permute.xlu1 %883  ;;  %v2663_v63 = vrot.slane %v2576_v49, %v1086_v33 }
 0x19f   : > { %v825_v24 = vsel %vm824_vm2, %v809_v9, %v817_v38  ;;  %v829_v60 = vsel %vm824_vm2, %v817_v38, %v809_v9  ;;  %v2630_v38 = vrot.slane %v2576_v49, %v981_v36  ;;  %v1159_v36 = vsub.s32 6, %v2561_v27 }
 0x1a0   : > { %v841_v13 = vmul.f32 %v2588_v16, %v829_v60  ;;  %v842_v5 = vmul.f32 %v2591_v44, %v825_v24  ;;  %822 = vrot.lane.b32.xlu1 %v2500_v53, %s2062_s16 }
 0x1a2   : > { %v890_v10 = vpop.permute.xlu0 %889  ;;  %v2626_v55 = vpop.permute.xlu1 %956  ;;  %v865_v9 = vmul.f32 %v2312_v34, %v841_v13  ;;  %v866_v31 = vmul.f32 %v2312_v34, %v842_v5  ;;  %v793_v13 = vmul.f32 %v2498_v50, %v765_v4  ;;  %v1044_v4 = vmul.f32 %v2412_v58, %v2374_v25 }
 0x1a3   : > { %v898_v24 = vsel %vm897_vm3, %v882_v3, %v890_v10  ;;  %v902_v60 = vsel %vm897_vm3, %v890_v10, %v882_v3  ;;  %v792_v10 = vmul.f32 %v2498_v50, %v764_v2  ;;  %v2666_v50 = vrot.slane %v2581_v46, %v1086_v33 }
 0x1a4   : > { %v914_v32 = vmul.f32 %v2619_v23, %v902_v60  ;;  %v915_v22 = vmul.f32 %v2622_v61, %v898_v24  ;;  %895 = vrot.lane.b32.xlu1 %v2500_v53, %s2059_s25  ;;  %v874_v2 = vadd.f32 %v866_v31, %v793_v13  ;;  %s1776_s25 = sshll.u32 %s485_s29, 4 }
 0x1a6   : > { %v938_v34 = vmul.f32 %v2376_v26, %v914_v32  ;;  %v939_v5 = vmul.f32 %v2376_v26, %v915_v22  ;;  %v963_v3 = vpop.permute.xlu0 %962  ;;  %v2654_v24 = vpop.permute.xlu1 %1061  ;;  %v873_v32 = vadd.f32 %v865_v9, %v792_v10 }
 0x1a7   : > { %v971_v60 = vsel %vm970_vm4, %v2541_v6, %v963_v3  ;;  %v975_v18 = vsel %vm970_vm4, %v963_v3, %v2541_v6  ;;  %v2677_v6 = vrot.slane %v2576_v49, %v1159_v36 }
 0x1a8   : > { %v987_v22 = vmul.f32 %v2630_v38, %v975_v18  ;;  %v988_v26 = vmul.f32 %v2637_v40, %v971_v60  ;;  %968 = vrot.lane.b32.xlu1 %v2500_v53, %s2061_s30  ;;  %v946_v33 = vadd.f32 %v938_v34, %v873_v32  ;;  %v947_v9 = vadd.f32 %v939_v5, %v874_v2  ;;  %s487_s30 = scalar_lea.vmem [#allocation2], %s1776_s25 }
 0x1a9   : > { %v2690_v60 = vrot.slane %v2581_v46, %v1159_v36  ;;  %v1232_v34 = vsub.s32 7, %v2561_v27  ;;  %v2706_v27 = vld [vmem:[%s3160_s7 + $0x18] ss:$0 sm:$0xff]  ;;  %v1295_v36 = vsel %vm1294_vm6, %v2547_v8, %v2553_v14  ;;  %v1299_v2 = vsel %vm1294_vm6, %v2553_v14, %v2547_v8  ;;  %s1713_s16 = sshll.u32 %s487_s30, 4  ;;  %s3113_s16 = int_to_ptr.vmem [resolvable:$true] %s1713_s16 }
 0x1aa   : > { %v1011_v31 = vmul.f32 %v2395_v52, %v987_v22  ;;  %v1012_v10 = vmul.f32 %v2395_v52, %v988_v26  ;;  %v1068_v13 = vpop.permute.xlu0 %1067  ;;  %v2681_v3 = vpop.permute.xlu1 %1134  ;;  %s1985_s20 = scalar_lea.vmem %s3113_s16, 256 }
 0x1ab   : > { %v1076_v25 = vsel %vm1075_vm5, %v2545_v7, %v1068_v13  ;;  %v1080_v58 = vsel %vm1075_vm5, %v1068_v13, %v2545_v7  ;;  %v2701_v7 = vld [vmem:[%s3160_s7 + $0x10] ss:$0 sm:$0xff]  ;;  %v2731_v8 = vrot.slane %v2576_v49, %v1232_v34  ;;  %p1986_p11 = scmp.ne.s32.totalorder %s3113_s16, %s1985_s20 }
 0x1ac   : > { %v1019_v5 = vadd.f32 %v1011_v31, %v946_v33  ;;  %v1020_v18 = vadd.f32 %v1012_v10, %v947_v9  ;;  %v1092_v52 = vmul.f32 %v2663_v63, %v1076_v25  ;;  %v1093_v32 = vmul.f32 %v2666_v50, %v1080_v58  ;;  %1073 = vrot.lane.b32.xlu1 %v2500_v53, %s2063_s17  ;;  %s3232_s17 = smov 111  }
 0x1ad   : > { %v1311_v14 = vmul.f32 %v2701_v7, %v1295_v36  ;;  %p1987_p12 = pnand %p1986_p11, %p2186_p5 }
 0x1ae   : > { %v1051_v22 = vadd.f32 %v1043_v35, %v1019_v5  ;;  %v1052_v26 = vadd.f32 %v1044_v4, %v1020_v18  ;;  %v1141_v33 = vpop.permute.xlu0 %1140  ;;  %v2716_v9 = vpop.permute.xlu1 %1207  ;;  %v1116_v31 = vmul.f32 %v2429_v1, %v1092_v52  ;;  %v1117_v10 = vmul.f32 %v2429_v1, %v1093_v32 }
 0x1af   : > { %v1149_v13 = vsel %vm1148_vm7, %v2551_v12, %v1141_v33  ;;  %v1153_v25 = vsel %vm1148_vm7, %v1141_v33, %v2551_v12  ;;  %v2734_v1 = vrot.slane %v2581_v46, %v1232_v34  ;;  %v1312_v4 = vmul.f32 %v2706_v27, %v1299_v2  ;;  %v1385_v12 = vld [vmem:[%s3159_s6 + $0x10] sm:$0xff]  ;;  %p1988_p13 = pneg %p1987_p12 }
 0x1b0   : > { %v1165_v58 = vmul.f32 %v2677_v6, %v1149_v13  ;;  %v1166_v35 = vmul.f32 %v2690_v60, %v1153_v25  ;;  %1292 = vrot.lane.b32.xlu1 %v2500_v53, %s3232_s17  ;;  %v1124_v33 = vadd.f32 %v1116_v31, %v1051_v22  ;;  %v1125_v49 = vadd.f32 %v1117_v10, %v1052_v26 }
 0x1b1   : > { %v1335_v26 = vmul.f32 %v2486_v30, %v1311_v14  ;;  %v1336_v31 = vmul.f32 %v2486_v30, %v1312_v4 }
 0x1b2   : > { %v1189_v5 = vmul.f32 %v2450_v11, %v1165_v58  ;;  %v1190_v18 = vmul.f32 %v2450_v11, %v1166_v35  ;;  %v1214_v52 = vpop.permute.xlu0 %1213  ;;  %v740_v32 = vpop.permute.xlu1 %739 }
 0x1b3   : > { %v1222_v46 = vsel %vm1221_vm8, %v2557_v20, %v1214_v52  ;;  %v1226_v34 = vsel %vm1221_vm8, %v1214_v52, %v2557_v20  ;;  %v749_v11 = vsel %vm747_vm1, %v2559_v21, %v740_v32  ;;  %v753_v22 = vsel %vm747_vm1, %v740_v32, %v2559_v21 }
 0x1b4   : > { %v1238_v36 = vmul.f32 %v2731_v8, %v1222_v46  ;;  %v1239_v2 = vmul.f32 %v2734_v1, %v1226_v34  ;;  %1399 = vperm.xlu1 %1898, %v1385_v12   ;;  %v1197_v10 = vadd.f32 %v1189_v5, %v1124_v33  ;;  %v1198_v13 = vadd.f32 %v1190_v18, %v1125_v49 }
 0x1b5   : > { %v766_v35 = vmul.f32 %v2596_v42, %v753_v22  ;;  %v767_v52 = vmul.f32 %v2600_v28, %v749_v11 }
 0x1b6   : > { %v1262_v20 = vmul.f32 %v2466_v17, %v1238_v36  ;;  %v1263_v25 = vmul.f32 %v2466_v17, %v1239_v2  ;;  %v819_v58 = vpop.permute.xlu1 %818  ;;  %v1281_v2 = vpop.permute.xlu0 %1280 }
 0x1b7   : > { %v826_v21 = vsel %vm824_vm2, %v2571_v54, %v819_v58  ;;  %v830_v14 = vsel %vm824_vm2, %v819_v58, %v2571_v54  ;;  %v794_v34 = vmul.f32 %v2354_v15, %v766_v35  ;;  %v795_v36 = vmul.f32 %v2354_v15, %v767_v52 }
 0x1b8   : > { %v1270_v30 = vadd.f32 %v1262_v20, %v1197_v10  ;;  %v1271_v4 = vadd.f32 %v1263_v25, %v1198_v13  ;;  %v843_v12 = vmul.f32 %v2588_v16, %v830_v14  ;;  %v844_v5 = vmul.f32 %v2591_v44, %v826_v21 }
 0x1ba   : > { %v1343_v17 = vadd.f32 %v1335_v26, %v1270_v30  ;;  %v1344_v18 = vadd.f32 %v1336_v31, %v1271_v4  ;;  %v867_v32 = vmul.f32 %v2358_v19, %v843_v12  ;;  %v868_v33 = vmul.f32 %v2358_v19, %v844_v5  ;;  %v892_v49 = vpop.permute.xlu1 %891 }
 0x1bb   : > { %v899_v46 = vsel %vm897_vm3, %v2602_v56, %v892_v49  ;;  %v903_v54 = vsel %vm897_vm3, %v892_v49, %v2602_v56  ;;  %v1045_v5 = vmul.f32 %v2326_v41, %v2383_v29 }
 0x1bc   : > { %v916_v11 = vmul.f32 %v2619_v23, %v903_v54  ;;  %v917_v22 = vmul.f32 %v2622_v61, %v899_v46  ;;  %v1375_v19 = vmul.f32 %v2521_v59, %v1343_v17  ;;  %v1376_v26 = vmul.f32 %v2521_v59, %v1344_v18 }
 0x1bd   : > { %v875_v31 = vadd.f32 %v867_v32, %v794_v34  ;;  %v876_v10 = vadd.f32 %v868_v33, %v795_v36  ;;  %v1046_v46 = vmul.f32 %v2326_v41, %v2427_v0 }
 0x1be   : > { %v965_v13 = vpop.permute.xlu1 %964  ;;  %v940_v20 = vmul.f32 %v2318_v37, %v916_v11  ;;  %v941_v56 = vmul.f32 %v2318_v37, %v917_v22  ;;  %v2796_v59 = vadd.f32 %v2527_v62, %v1375_v19  ;;  %v2799_v52 = vadd.f32 %v2527_v62, %v1376_v26 }
 0x1bf   : > { %v972_v15 = vsel %vm970_vm4, %v2626_v55, %v965_v13  ;;  %v976_v25 = vsel %vm970_vm4, %v965_v13, %v2626_v55  ;;  %v1289_v55 = vpop.permute.xlu0 %1288 }
 0x1c0   : > { %v989_v58 = vmul.f32 %v2630_v38, %v976_v25  ;;  %v990_v35 = vmul.f32 %v2637_v40, %v972_v15  ;;  %v948_v21 = vadd.f32 %v940_v20, %v875_v31  ;;  %v949_v37 = vadd.f32 %v941_v56, %v876_v10 }
 0x1c1   : > { %v1793_v12 = vmul.f32 -1.442695, %v2796_v59  ;;  %v1794_v18 = vmul.f32 -1.442695, %v2799_v52  ;;  %v1296_v29 = vsel %vm1294_vm6, %v1281_v2, %v1289_v55  ;;  %v1300_v54 = vsel %vm1294_vm6, %v1289_v55, %v1281_v2 }
 0x1c2   : > { %v1013_v14 = vmul.f32 %v2322_v39, %v989_v58  ;;  %v1014_v30 = vmul.f32 %v2322_v39, %v990_v35  ;;  %v1070_v4 = vpop.permute.xlu1 %1069  ;;  %v1313_v13 = vmul.f32 %v2701_v7, %v1296_v29  ;;  %v1314_v20 = vmul.f32 %v2706_v27, %v1300_v54  ;;  %v3233_v29 = vld [vmem:[#allocation32_spill] sm:$0xff] }
 0x1c3   : > { %v1077_v17 = vsel %vm1075_vm5, %v2654_v24, %v1070_v4  ;;  %v1081_v62 = vsel %vm1075_vm5, %v1070_v4, %v2654_v24  ;;  %1931 = vpow2.f32 %v1793_v12 }
 0x1c4   : > { %v1021_v32 = vadd.f32 %v1013_v14, %v948_v21  ;;  %v1022_v33 = vadd.f32 %v1014_v30, %v949_v37  ;;  %v1094_v39 = vmul.f32 %v2663_v63, %v1077_v17  ;;  %v1095_v49 = vmul.f32 %v2666_v50, %v1081_v62  ;;  %v813_v62 = vpop.permute.xlu0 %812 }
 0x1c5   : > { %1933 = vpow2.f32 %v1794_v18  ;;  %v1337_v4 = vmul.f32 %v2338_v47, %v1313_v13  ;;  %v1338_v12 = vmul.f32 %v2338_v47, %v1314_v20 }
 0x1c6   : > { %v1053_v34 = vadd.f32 %v1045_v5, %v1021_v32  ;;  %v1143_v24 = vpop.permute.xlu1 %1142  ;;  %v1054_v36 = vadd.f32 %v1046_v46, %v1022_v33  ;;  %v1118_v41 = vmul.f32 %v2330_v43, %v1094_v39  ;;  %v1119_v0 = vmul.f32 %v2330_v43, %v1095_v49 }
 0x1c7   : > { %v1150_v11 = vsel %vm1148_vm7, %v2681_v3, %v1143_v24  ;;  %v1154_v22 = vsel %vm1148_vm7, %v1143_v24, %v2681_v3 }
 0x1c8   : > { %v1167_v19 = vmul.f32 %v2677_v6, %v1150_v11  ;;  %v1168_v2 = vmul.f32 %v2690_v60, %v1154_v22  ;;  %v1126_v56 = vadd.f32 %v1118_v41, %v1053_v34  ;;  %v1127_v15 = vadd.f32 %v1119_v0, %v1054_v36  ;;  %v886_v34 = vpop.permute.xlu0 %885 }
 0x1ca   : > { %v1191_v26 = vmul.f32 %v2334_v45, %v1167_v19  ;;  %v1192_v31 = vmul.f32 %v2334_v45, %v1168_v2  ;;  %v1216_v10 = vpop.permute.xlu1 %1215 }
 0x1cb   : > { %v1223_v3 = vsel %vm1221_vm8, %v2716_v9, %v1216_v10  ;;  %v1227_v43 = vsel %vm1221_vm8, %v1216_v10, %v2716_v9 }
 0x1cc   : > { %v1240_v25 = vmul.f32 %v2731_v8, %v1223_v3  ;;  %v1241_v58 = vmul.f32 %v2734_v1, %v1227_v43  ;;  %v1199_v45 = vadd.f32 %v1191_v26, %v1126_v56  ;;  %v1200_v35 = vadd.f32 %v1192_v31, %v1127_v15  ;;  %v959_v0 = vpop.permute.xlu0 %958 }
 0x1cd   : > { %v1932_v30 = vpop.eup %1931 }
 0x1ce   : > { %v1264_v21 = vmul.f32 %v2340_v48, %v1240_v25  ;;  %v1265_v37 = vmul.f32 %v2340_v48, %v1241_v58  ;;  %v734_v14 = vpop.permute.xlu1 %733  ;;  %v1439_v5 = vadd.f32 1.0, %v1932_v30  ;;  %v3234_v30 = vld [vmem:[#allocation10_spill] sm:$0xff] }
 0x1cf   : > { %v1934_v17 = vpop.eup %1933 }
 0x1d0   : > { %v1272_v55 = vadd.f32 %v1264_v21, %v1199_v45  ;;  %v1273_v9 = vadd.f32 %v1265_v37, %v1200_v35  ;;  %v1440_v39 = vadd.f32 1.0, %v1934_v17  ;;  %1935 = vrcp.f32 %v1439_v5  ;;  %v3235_v17 = vld [vmem:[#allocation18_spill] sm:$0xff] }
 0x1d2   : > { %v1345_v18 = vadd.f32 %v1337_v4, %v1272_v55  ;;  %v1346_v32 = vadd.f32 %v1338_v12, %v1273_v9  ;;  %v2847_v33 = vpop.permute.xlu1 %1063  ;;  %1937 = vrcp.f32 %v1440_v39 }
 0x1d4   : > { %v1377_v48 = vmul.f32 %v2519_v51, %v1345_v18  ;;  %v1378_v49 = vmul.f32 %v2519_v51, %v1346_v32  ;;  %v3236_v32 = vld [vmem:[#allocation19_spill] sm:$0xff] }
 0x1d6   : > { %v1210_v46 = vpop.permute.xlu1 %1209  ;;  %v2852_v54 = vadd.f32 %v3233_v29, %v1377_v48  ;;  %v2855_v47 = vadd.f32 %v3233_v29, %v1378_v49 }
 0x1d8   : > { %v1795_v24 = vmul.f32 -1.442695, %v2852_v54  ;;  %v1796_v36 = vmul.f32 -1.442695, %v2855_v47 }
 0x1da   : > { %v2859_v11 = vpop.permute.xlu1 %1282  ;;  %1939 = vpow2.f32 %v1795_v24  ;;  %v1936_v22 = vpop.eup %1935 }
 0x1db   : > { %1941 = vpow2.f32 %v1796_v36  ;;  %v2862_v41 = vmul.f32 %v1936_v22, %v2796_v59 }
 0x1dc   : > { %v1938_v51 = vpop.eup %1937 }
 0x1dd   : > { %v2865_v2 = vmul.f32 %v1938_v51, %v2799_v52  ;;  %v1137_v52 = vpop.permute.xlu0 %1136 }
 0x1de   : > { %v742_v19 = vpop.permute.xlu1 %741 }
 0x1df   : > { %v1471_v26 = vadd.f32 %v2865_v2, %v2862_v41  ;;  %v750_v10 = vsel %vm747_vm1, %v734_v14, %v742_v19  ;;  %v754_v13 = vsel %vm747_vm1, %v742_v19, %v734_v14 }
 0x1e0   : > { %v768_v58 = vmul.f32 %v2596_v42, %v754_v13  ;;  %v769_v45 = vmul.f32 %v2600_v28, %v750_v10  ;;  %v3237_v13 = vld [vmem:[#allocation20_spill] sm:$0xff] }
 0x1e1   : > { %1472 = vadd.xlane.f32.xlu1 %v1471_v26  ;;  %v1218_v5 = vpop.permute.xlu0 %1217 }
 0x1e2   : > { %v821_v31 = vpop.permute.xlu1 %820  ;;  %v797_v18 = vmul.f32 %v3235_v17, %v769_v45  ;;  %v1224_v19 = vsel %vm1221_vm8, %v1210_v46, %v1218_v5  ;;  %v1228_v26 = vsel %vm1221_vm8, %v1218_v5, %v1210_v46 }
 0x1e3   : > { %v827_v59 = vsel %vm824_vm2, %v813_v62, %v821_v31  ;;  %v831_v20 = vsel %vm824_vm2, %v821_v31, %v813_v62  ;;  %v796_v62 = vmul.f32 %v3235_v17, %v768_v58  ;;  %v3241_v17 = vld [vmem:[#allocation22_spill] sm:$0xff] }
 0x1e4   : > { %v1940_v3 = vpop.eup %1939  ;;  %v845_v43 = vmul.f32 %v2588_v16, %v831_v20  ;;  %v846_v56 = vmul.f32 %v2591_v44, %v827_v59 }
 0x1e5   : > { %v1942_v15 = vpop.eup %1941  ;;  %v1441_v25 = vadd.f32 1.0, %v1940_v3  ;;  %v1291_v45 = vpop.permute.xlu0 %1290 }
 0x1e6   : > { %v894_v35 = vpop.permute.xlu1 %893  ;;  %v1442_v21 = vadd.f32 1.0, %v1942_v15  ;;  %v869_v4 = vmul.f32 %v3234_v30, %v845_v43  ;;  %v870_v12 = vmul.f32 %v3234_v30, %v846_v56  ;;  %v3239_v43 = vld [vmem:[#allocation21_spill] sm:$0xff] }
 0x1e7   : > { %v900_v37 = vsel %vm897_vm3, %v886_v34, %v894_v35  ;;  %v904_v14 = vsel %vm897_vm3, %v894_v35, %v886_v34  ;;  %1943 = vrcp.f32 %v1441_v25  ;;  %v3240_v15 = vld [vmem:[#allocation25_spill] sm:$0xff] }
 0x1e8   : > { %v918_v55 = vmul.f32 %v2619_v23, %v904_v14  ;;  %v919_v9 = vmul.f32 %v2622_v61, %v900_v37  ;;  %1945 = vrcp.f32 %v1442_v21  ;;  %v877_v24 = vadd.f32 %v869_v4, %v796_v62 }
 0x1e9   : > { %v878_v36 = vadd.f32 %v870_v12, %v797_v18  ;;  %v1048_v25 = vmul.f32 %v3239_v43, %v3240_v15  ;;  %v1242_v4 = vmul.f32 %v2731_v8, %v1224_v19  ;;  %v1243_v12 = vmul.f32 %v2734_v1, %v1228_v26  ;;  %v3242_v26 = vld [vmem:[#allocation24_spill] sm:$0xff] }
 0x1ea   : > { %v942_v39 = vmul.f32 %v3236_v32, %v918_v55  ;;  %v943_v48 = vmul.f32 %v3236_v32, %v919_v9  ;;  %v967_v49 = vpop.permute.xlu1 %966  ;;  %v1297_v55 = vsel %vm1294_vm6, %v2859_v11, %v1291_v45 }
 0x1eb   : > { %v973_v29 = vsel %vm970_vm4, %v959_v0, %v967_v49  ;;  %v977_v34 = vsel %vm970_vm4, %v967_v49, %v959_v0  ;;  %v3238_v0 = vld [vmem:[#allocation23_spill] sm:$0xff] }
 0x1ec   : > { %v991_v22 = vmul.f32 %v2630_v38, %v977_v34  ;;  %v992_v51 = vmul.f32 %v2637_v40, %v973_v29  ;;  %v950_v31 = vadd.f32 %v942_v39, %v877_v24  ;;  %v951_v10 = vadd.f32 %v943_v48, %v878_v36 }
 0x1ed   : > { %v1047_v56 = vmul.f32 %v3239_v43, %v3238_v0  ;;  %v1301_v39 = vsel %vm1294_vm6, %v1291_v45, %v2859_v11  ;;  %v1315_v11 = vmul.f32 %v2701_v7, %v1297_v55 }
 0x1ee   : > { %v1015_v59 = vmul.f32 %v3237_v13, %v991_v22  ;;  %v1016_v20 = vmul.f32 %v3237_v13, %v992_v51  ;;  %v1072_v3 = vpop.permute.xlu1 %1071  ;;  %v1316_v19 = vmul.f32 %v2706_v27, %v1301_v39  ;;  %v3243_v13 = vld [vmem:[#allocation26_spill] sm:$0xff] }
 0x1ef   : > { %v1078_v58 = vsel %vm1075_vm5, %v2847_v33, %v1072_v3  ;;  %v1082_v46 = vsel %vm1075_vm5, %v1072_v3, %v2847_v33 }
 0x1f0   : > { %v1023_v35 = vadd.f32 %v1015_v59, %v950_v31  ;;  %v1024_v21 = vadd.f32 %v1016_v20, %v951_v10  ;;  %v1096_v37 = vmul.f32 %v2663_v63, %v1078_v58  ;;  %v1097_v14 = vmul.f32 %v2666_v50, %v1082_v46 }
 0x1f1   : > { %v1944_v30 = vpop.eup %1943  ;;  %v1266_v59 = vmul.f32 %v3243_v13, %v1242_v4  ;;  %v1267_v20 = vmul.f32 %v3243_v13, %v1243_v12 }
 0x1f2   : > { %v1055_v9 = vadd.f32 %v1047_v56, %v1023_v35  ;;  %v1056_v5 = vadd.f32 %v1048_v25, %v1024_v21  ;;  %v1120_v33 = vmul.f32 %v3241_v17, %v1096_v37  ;;  %v1121_v62 = vmul.f32 %v3241_v17, %v1097_v14  ;;  %v1145_v18 = vpop.permute.xlu1 %1144  ;;  %v1946_v32 = vpop.eup %1945 }
 0x1f3   : > { %v1151_v48 = vsel %vm1148_vm7, %v1137_v52, %v1145_v18  ;;  %v1155_v49 = vsel %vm1148_vm7, %v1145_v18, %v1137_v52  ;;  %v2932_v29 = vmul.f32 %v1944_v30, %v2852_v54  ;;  %v2937_v51 = vmul.f32 %v1946_v32, %v2855_v47  ;;  %v3244_v47 = vld [vmem:[#allocation28_spill] sm:$0xff]  ;;  %v815_v14 = vpop.permute.xlu0 %814 }
 0x1f4   : > { %v1128_v34 = vadd.f32 %v1120_v33, %v1055_v9  ;;  %v1129_v24 = vadd.f32 %v1121_v62, %v1056_v5  ;;  %v1169_v36 = vmul.f32 %v2677_v6, %v1151_v48  ;;  %v1170_v22 = vmul.f32 %v2690_v60, %v1155_v49 }
 0x1f5   : > { %v1474_v54 = vadd.f32 %v2937_v51, %v2932_v29  ;;  %v1339_v43 = vmul.f32 %v3244_v47, %v1315_v11  ;;  %v1340_v56 = vmul.f32 %v3244_v47, %v1316_v19  ;;  %v3246_v19 = vld [vmem:[#allocation30_spill] sm:$0xff] }
 0x1f6   : > { %v1193_v31 = vmul.f32 %v3242_v26, %v1169_v36  ;;  %v1194_v52 = vmul.f32 %v3242_v26, %v1170_v22  ;;  %v736_v10 = vpop.permute.xlu1 %735  ;;  %v3245_v36 = vld [vmem:[#allocation11_spill] sm:$0xff] }
 0x1f7   : > { %1475 = vadd.xlane.f32.xlu0 %v1474_v54  ;;  %v1285_v12 = vpop.permute.xlu0 %1284 }
 0x1f8   : > { %v1201_v3 = vadd.f32 %v1193_v31, %v1128_v34  ;;  %v1202_v0 = vadd.f32 %v1194_v52, %v1129_v24 }
 0x1fa   : > { %v888_v15 = vpop.permute.xlu1 %887  ;;  %v1274_v25 = vadd.f32 %v1266_v59, %v1201_v3  ;;  %v1275_v58 = vadd.f32 %v1267_v20, %v1202_v0 }
 0x1fb   : > { %v1147_v32 = vpop.permute.xlu0 %1146 }
 0x1fc   : > { %v2949_v46 = vadd.f32 %v1339_v43, %v1274_v25  ;;  %v2951_v45 = vadd.f32 %v1340_v56, %v1275_v58  ;;  %v3249_v25 = vld [vmem:[#allocation14_spill] sm:$0xff] }
 0x1fe   : > { %v961_v35 = vpop.permute.xlu1 %960 }
 0x1ff   : > { %v1220_v59 = vpop.permute.xlu0 %1219 }
 0x202   : > { %v1066_v21 = vpop.permute.xlu1 %1065 }
 0x206   : > { %v1139_v37 = vpop.permute.xlu1 %1138 }
 0x207   : > { %v1152_v54 = vsel %vm1148_vm7, %v1139_v37, %v1147_v32  ;;  %v1156_v13 = vsel %vm1148_vm7, %v1147_v32, %v1139_v37  ;;  %v1050_v37 = vmul.f32 %v3249_v25, %v2500_v53 }
 0x20a   : > { %v1212_v30 = vpop.permute.xlu1 %1211 }
 0x20b   : > { %v1225_v43 = vsel %vm1221_vm8, %v1212_v30, %v1220_v59  ;;  %v1229_v56 = vsel %vm1221_vm8, %v1220_v59, %v1212_v30  ;;  %v1405_v59 = vpop.permute.xlu0 %1404 }
 0x20c   : > { %v1244_v32 = vmul.f32 %v2731_v8, %v1225_v43 }
 0x20e   : > { %v744_v4 = vpop.permute.xlu1 %743 }
 0x20f   : > { %v751_v9 = vsel %vm747_vm1, %v736_v10, %v744_v4  ;;  %v755_v5 = vsel %vm747_vm1, %v744_v4, %v736_v10  ;;  %v3250_v4 = vld [vmem:[#allocation13_spill] sm:$0xff] }
 0x210   : > { %v770_v39 = vmul.f32 %v2596_v42, %v755_v5  ;;  %v771_v48 = vmul.f32 %v2600_v28, %v751_v9  ;;  %v3247_v28 = vld [vmem:[#allocation12_spill] sm:$0xff]  ;;  %v1172_v5 = vmul.f32 %v2690_v60, %v1156_v13 }
 0x212   : > { %v823_v55 = vpop.permute.xlu1 %822  ;;  %v798_v26 = vmul.f32 %v3246_v19, %v770_v39  ;;  %v799_v42 = vmul.f32 %v3246_v19, %v771_v48  ;;  %v1245_v39 = vmul.f32 %v2734_v1, %v1229_v56 }
 0x213   : > { %v828_v17 = vsel %vm824_vm2, %v815_v14, %v823_v55  ;;  %v832_v33 = vsel %vm824_vm2, %v823_v55, %v815_v14 }
 0x214   : > { %v847_v62 = vmul.f32 %v2588_v16, %v832_v33  ;;  %v848_v18 = vmul.f32 %v2591_v44, %v828_v17 }
 0x216   : > { %v896_v49 = vpop.permute.xlu1 %895  ;;  %v871_v22 = vmul.f32 %v3245_v36, %v847_v62  ;;  %v872_v11 = vmul.f32 %v3245_v36, %v848_v18  ;;  %v3252_v36 = vld [vmem:[#allocation16_spill] sm:$0xff] }
 0x217   : > { %v901_v34 = vsel %vm897_vm3, %v888_v15, %v896_v49  ;;  %v905_v24 = vsel %vm897_vm3, %v896_v49, %v888_v15  ;;  %v3248_v15 = vld [vmem:[#allocation27_spill] sm:$0xff] }
 0x218   : > { %v920_v16 = vmul.f32 %v2619_v23, %v905_v24  ;;  %v921_v44 = vmul.f32 %v2622_v61, %v901_v34  ;;  %v879_v20 = vadd.f32 %v871_v22, %v798_v26  ;;  %v880_v3 = vadd.f32 %v872_v11, %v799_v42  ;;  %v3251_v49 = vld [vmem:[#allocation15_spill] sm:$0xff] }
 0x219   : > { %v1049_v58 = vmul.f32 %v3249_v25, %v3248_v15 }
 0x21a   : > { %v944_v31 = vmul.f32 %v3247_v28, %v920_v16  ;;  %v945_v52 = vmul.f32 %v3247_v28, %v921_v44  ;;  %v969_v10 = vpop.permute.xlu1 %968  ;;  %v3253_v44 = vld [vmem:[#allocation17_spill] sm:$0xff] }
 0x21b   : > { %v974_v23 = vsel %vm970_vm4, %v961_v35, %v969_v10  ;;  %v978_v61 = vsel %vm970_vm4, %v969_v10, %v961_v35  ;;  %v1268_v19 = vmul.f32 %v3253_v44, %v1244_v32  ;;  %v1269_v26 = vmul.f32 %v3253_v44, %v1245_v39  ;;  %v3254_v10 = vld [vmem:[#allocation29_spill] sm:$0xff] }
 0x21c   : > { %v993_v0 = vmul.f32 %v2630_v38, %v978_v61  ;;  %v994_v47 = vmul.f32 %v2637_v40, %v974_v23  ;;  %v952_v35 = vadd.f32 %v944_v31, %v879_v20  ;;  %v953_v14 = vadd.f32 %v945_v52, %v880_v3  ;;  %v3255_v23 = vld [vmem:[#allocation33_spill] sm:$0xff] }
 0x21d   : > { %v1171_v40 = vmul.f32 %v2677_v6, %v1152_v54 }
 0x21e   : > { %v1017_v55 = vmul.f32 %v3250_v4, %v993_v0  ;;  %v1018_v38 = vmul.f32 %v3250_v4, %v994_v47  ;;  %v1074_v9 = vpop.permute.xlu1 %1073  ;;  %v3256_v47 = vld [vmem:[#allocation31_spill] sm:$0xff] }
 0x21f   : > { %v1079_v30 = vsel %vm1075_vm5, %v1066_v21, %v1074_v9  ;;  %v1083_v17 = vsel %vm1075_vm5, %v1074_v9, %v1066_v21  ;;  %v1195_v22 = vmul.f32 %v3252_v36, %v1171_v40  ;;  %v1196_v21 = vmul.f32 %v3252_v36, %v1172_v5  ;;  %v1487_v36 = vld [vmem:[%s3161_s8] sm:$0xff] }
 0x220   : > { %v1025_v33 = vadd.f32 %v1017_v55, %v952_v35  ;;  %v1026_v62 = vadd.f32 %v1018_v38, %v953_v14  ;;  %v1098_v53 = vmul.f32 %v2663_v63, %v1079_v30  ;;  %v1099_v18 = vmul.f32 %v2666_v50, %v1083_v17 }
 0x221   : > { %v1379_v43 = vmul.f32 %v3256_v47, %v2949_v46  ;;  %v1380_v56 = vmul.f32 %v3256_v47, %v2951_v45 }
 0x222   : > { %v1057_v48 = vadd.f32 %v1049_v58, %v1025_v33  ;;  %v1058_v6 = vadd.f32 %v1050_v37, %v1026_v62  ;;  %v1122_v60 = vmul.f32 %v3251_v49, %v1098_v53  ;;  %v1123_v34 = vmul.f32 %v3251_v49, %v1099_v18  ;;  %v1293_v24 = vpop.permute.xlu1 %1292 }
 0x223   : > { %v1298_v63 = vsel %vm1294_vm6, %v1285_v12, %v1293_v24  ;;  %v1302_v50 = vsel %vm1294_vm6, %v1293_v24, %v1285_v12 }
 0x224   : > { %v1130_v8 = vadd.f32 %v1122_v60, %v1057_v48  ;;  %v1131_v11 = vadd.f32 %v1123_v34, %v1058_v6  ;;  %v1317_v1 = vmul.f32 %v2701_v7, %v1298_v63  ;;  %v1318_v16 = vmul.f32 %v2706_v27, %v1302_v50  ;;  %v1488_v34 = vld [vmem:[%s3161_s8 + $0x8] sm:$0xff] }
 0x226   : > { %v1203_v42 = vadd.f32 %v1195_v22, %v1130_v8  ;;  %v1204_v28 = vadd.f32 %v1196_v21, %v1131_v11  ;;  %v1341_v54 = vmul.f32 %v3254_v10, %v1317_v1  ;;  %v1342_v13 = vmul.f32 %v3254_v10, %v1318_v16  ;;  %v1490_v8 = vld [vmem:[%s3161_s8 + $0x18] sm:$0xff]  ;;  %v1489_v11 = vld [vmem:[%s3161_s8 + $0x10] sm:$0xff] }
 0x228   : > { %v1276_v31 = vadd.f32 %v1268_v19, %v1203_v42  ;;  %v1277_v52 = vadd.f32 %v1269_v26, %v1204_v28 }
 0x22a   : > { %v1349_v57 = vadd.f32 %v1341_v54, %v1276_v31  ;;  %v1350_v12 = vadd.f32 %v1342_v13, %v1277_v52 }
 0x22c   : > { %v1381_v61 = vmul.f32 %v3255_v23, %v1349_v57  ;;  %v1382_v7 = vmul.f32 %v3255_v23, %v1350_v12 }
 0x22e   : > { %v1413_v27 = vadd.f32 %v1405_v59, %v1381_v61  ;;  %v1414_v20 = vadd.f32 %v1405_v59, %v1382_v7  ;;  %v1509_v7 = vld [vmem:[%s3162_s9] sm:$0x1] }
 0x230   : > { %v1799_v3 = vmul.f32 -1.442695, %v1413_v27  ;;  %v1800_v0 = vmul.f32 -1.442695, %v1414_v20 }
 0x232   : > { %1947 = vpow2.f32 %v1799_v3 }
 0x233   : > { %v1400_v15 = vpop.permute.xlu1 %1399  ;;  %1949 = vpow2.f32 %v1800_v0 }
 0x234   : > { %v1411_v25 = vadd.f32 %v1400_v15, %v1379_v43  ;;  %v1412_v58 = vadd.f32 %v1400_v15, %v1380_v56  ;;  %v1519_v56 = vld [vmem:[%s3163_s10 + $0x8] sm:$0xff]  ;;  %v1518_v15 = vld [vmem:[%s3163_s10] sm:$0xff] }
 0x236   : > { %v1797_v37 = vmul.f32 -1.442695, %v1411_v25  ;;  %v1798_v35 = vmul.f32 -1.442695, %v1412_v58 }
 0x238   : > { %1951 = vpow2.f32 %v1797_v37  ;;  %v1521_v37 = vld [vmem:[%s3163_s10 + $0x18] sm:$0xff] }
 0x239   : > { %1953 = vpow2.f32 %v1798_v35  ;;  %v1520_v35 = vld [vmem:[%s3163_s10 + $0x10] sm:$0xff] }
 0x23c   : > { %v1948_v14 = vpop.eup %1947 }
 0x23d   : > { %v1950_v4 = vpop.eup %1949  ;;  %v1445_v55 = vadd.f32 1.0, %v1948_v14 }
 0x23e   : > { %v1446_v38 = vadd.f32 1.0, %v1950_v4 }
 0x23f   : > { %1955 = vrcp.f32 %v1445_v55 }
 0x240   : > { %1957 = vrcp.f32 %v1446_v38 }
 0x242   : > { %v1952_v9 = vpop.eup %1951 }
 0x243   : > { %v1954_v46 = vpop.eup %1953  ;;  %v1443_v40 = vadd.f32 1.0, %v1952_v9 }
 0x244   : > { %v1444_v5 = vadd.f32 1.0, %v1954_v46 }
 0x245   : > { %1959 = vrcp.f32 %v1443_v40 }
 0x246   : > { %1961 = vrcp.f32 %v1444_v5 }
 0x249   : > { %v1956_v45 = vpop.eup %1955 }
 0x24a   : > { %v1958_v30 = vpop.eup %1957  ;;  %v3027_v17 = vmul.f32 %v1956_v45, %v1413_v27  ;;  %v1543_v45 = vld [vmem:[%s3164_s11 + $0x8] sm:$0xff] }
 0x24b   : > { %v3029_v33 = vmul.f32 %v1958_v30, %v1414_v20  ;;  %v1542_v30 = vld [vmem:[%s3164_s11] sm:$0xff] }
 0x24d   : > { %v1480_v62 = vadd.f32 %v3029_v33, %v3027_v17 }
 0x24f   : > { %v1960_v53 = vpop.eup %1959  ;;  %1481 = vadd.xlane.f32.xlu1 %v1480_v62 }
 0x250   : > { %v1962_v18 = vpop.eup %1961  ;;  %v3033_v32 = vmul.f32 %v1960_v53, %v1411_v25  ;;  %v3257_v25 = vld [vmem:[#allocation34_spill] sm:$0xff] }
 0x251   : > { %v3035_v39 = vmul.f32 %v1962_v18, %v1412_v58 }
 0x253   : > { %v1477_v48 = vadd.f32 %v3035_v39, %v3033_v32 }
 0x255   : > { %1478 = vadd.xlane.f32.xlu0 %v1477_v48 }
 0x26e   : > { %v1473_v49 = vpop.xlane.xlu1 %1472 }
 0x26f   : > { %v1483_v24 = vmul.f32 0.00390625, %v1473_v49  ;;  %v1544_v49 = vld [vmem:[%s3164_s11 + $0x10] sm:$0xff] }
 0x271   : > { %v1491_v63 = vmul.f32 %v1487_v36, %v1483_v24 }
 0x273   : > { %v1496_v19 = vsel %vm1495_vm9, %v1491_v63, 0.0 }
 0x284   : > { %v1476_v6 = vpop.xlane.xlu0 %1475 }
 0x285   : > { %v1484_v60 = vmul.f32 0.00390625, %v1476_v6  ;;  %v1545_v6 = vld [vmem:[%s3164_s11 + $0x18] sm:$0xff] }
 0x287   : > { %v1492_v21 = vmul.f32 %v1488_v34, %v1484_v60 }
 0x289   : > { %v1497_v16 = vsel %vm1495_vm9, %v1492_v21, 0.0 }
 0x28a   : > { %v1498_v28 = vadd.f32 %v1497_v16, %v1496_v19 }
 0x2dc   : > { %v1482_v22 = vpop.xlane.xlu1 %1481 }
 0x2dd   : > { %v1486_v50 = vmul.f32 0.00390625, %v1482_v22 }
 0x2df   : > { %v1494_v26 = vmul.f32 %v1490_v8, %v1486_v50 }
 0x2e1   : > { %v1501_v10 = vsel %vm1495_vm9, %v1494_v26, 0.0 }
 0x2e2   : > { %v1479_v1 = vpop.xlane.xlu0 %1478 }
 0x2e3   : > { %v1485_v44 = vmul.f32 0.00390625, %v1479_v1 }
 0x2e5   : > { %v1493_v42 = vmul.f32 %v1489_v11, %v1485_v44 }
 0x2e7   : > { %v1499_v31 = vsel %vm1495_vm9, %v1493_v42, 0.0 }
 0x2e8   : > { %v1500_v52 = vadd.f32 %v1499_v31, %v1498_v28 }
 0x2ea   : > { %v1502_v54 = vadd.f32 %v1501_v10, %v1500_v52 }
 0x2ec   : > { %v1503_v13 = vrot.slane %v1502_v54, 4 }
 0x2ee   : > { %v1504_v57 = vadd.f32 %v1503_v13, %v1502_v54  ;;  %v1686_v54 = vld [vmem:[%s3167_s14] sm:$0xff] }
 0x2ef   : > { %v1678_v13 = vld [vmem:[%s3166_s13] sm:$0xff] }
 0x2f0   : > { %v1505_v12 = vrot.slane %v1504_v57, 2 }
 0x2f2   : > { %v1506_v23 = vadd.f32 %v1505_v12, %v1504_v57 }
 0x2f4   : > { %v1507_v61 = vrot.slane %v1506_v23, 1 }
 0x2f6   : > { %v1508_v59 = vadd.f32 %v1507_v61, %v1506_v23 }
 0x2f8   : > { %v1510_v27 = vadd.f32 %v1509_v7, %v1508_v59 }
 0x2fa   : > { %v1801_v20 = vmul.f32 -1.442695, %v1510_v27 }
 0x2fc   : > { %1963 = vpow2.f32 %v1801_v20 }
 0x306   : > { %v1964_v3 = vpop.eup %1963 }
 0x307   : > { %v1514_v0 = vadd.f32 1.0, %v1964_v3 }
 0x309   : > { %1965 = vrcp.f32 %v1514_v0 }
 0x313   : > { %v1966_v47 = vpop.eup %1965 }
 0x314   : > { %v1517_v43 = vmul.f32 %v1966_v47, %v1510_v27 }
 0x316   : > { %v1525_v58 = vrot.slane %v1517_v43, %v3257_v25 }
 0x318   : > { %v1527_v14 = vmul.f32 %v1525_v58, %v1519_v56  ;;  %v1526_v4 = vmul.f32 %v1525_v58, %v1518_v15  ;;  %v1529_v9 = vmul.f32 %v1525_v58, %v1521_v37  ;;  %v1528_v46 = vmul.f32 %v1525_v58, %v1520_v35  ;;  %v1983_v35 = vld [vmem:[%s2216_s24] sm:$0xff] }
 0x31a   : > { %v1533_v55 = vsel %vm1495_vm9, %v1527_v14, 0.0  ;;  %v1530_v38 = vsel %vm1495_vm9, %v1526_v4, 0.0  ;;  %v1539_v40 = vsel %vm1495_vm9, %v1529_v9, 0.0  ;;  %v1536_v5 = vsel %vm1495_vm9, %v1528_v46, 0.0  ;;  %v1984_v4 = vld [vmem:[%s2216_s24 + $0x8] sm:$0xff]  ;;  %s2067_s24 = smov [#allocation2]  }
 0x31b   : > { %1534 = vadd.xlane.f32.xlu1 %v1533_v55  ;;  %1531 = vadd.xlane.f32.xlu0 %v1530_v38  ;;  %s1989_s18 = sshll.u32 %s2067_s24, 4  ;;  %s1990_s18 = int_to_ptr.vmem [resolvable:$false] %s1989_s18 }
 0x31c   : > { %s1991_s25 = scalar_lea.vmem %s1990_s18, 512  ;;  %p1992_p0 = scmp.lt.s32.totalorder %s3113_s16, %s1990_s18 }
 0x31d   : > { %p1993_p1 = scmp.lt.s32.totalorder %s1991_s25, %s1985_s20 }
 0x31f   : > { %1540 = vadd.xlane.f32.xlu1 %v1539_v40  ;;  %1537 = vadd.xlane.f32.xlu0 %v1536_v5  ;;  %p1994_p2 = por %p1993_p1, %p1992_p0 }
 0x321   : > { %p1995_p3 = pnand %p1994_p2, %p1988_p13 }
 0x3a8   : > { %v1535_v62 = vpop.xlane.xlu1 %1534  ;;  %v1532_v53 = vpop.xlane.xlu0 %1531 }
 0x3a9   : > { %v1547_v18 = vadd.f32 %v1543_v45, %v1535_v62  ;;  %v1546_v48 = vadd.f32 %v1542_v30, %v1532_v53 }
 0x3ab   : > { %v1803_v60 = vmul.f32 -1.442695, %v1547_v18  ;;  %v1802_v34 = vmul.f32 -1.442695, %v1546_v48 }
 0x3ac   : > { %v1541_v24 = vpop.xlane.xlu1 %1540  ;;  %v1538_v36 = vpop.xlane.xlu0 %1537 }
 0x3ad   : > { %1967 = vpow2.f32 %v1803_v60  ;;  %v1549_v22 = vadd.f32 %v1545_v6, %v1541_v24  ;;  %v1548_v21 = vadd.f32 %v1544_v49, %v1538_v36 }
 0x3ae   : > { %1969 = vpow2.f32 %v1802_v34 }
 0x3af   : > { %v1805_v63 = vmul.f32 -1.442695, %v1549_v22  ;;  %v1804_v50 = vmul.f32 -1.442695, %v1548_v21 }
 0x3b1   : > { %1971 = vpow2.f32 %v1805_v63 }
 0x3b2   : > { %1973 = vpow2.f32 %v1804_v50 }
 0x3b7   : > { %v1968_v8 = vpop.eup %1967 }
 0x3b8   : > { %v1970_v11 = vpop.eup %1969  ;;  %v1563_v1 = vadd.f32 1.0, %v1968_v8 }
 0x3b9   : > { %v1562_v16 = vadd.f32 1.0, %v1970_v11 }
 0x3ba   : > { %1975 = vrcp.f32 %v1563_v1 }
 0x3bb   : > { %v1972_v44 = vpop.eup %1971  ;;  %1977 = vrcp.f32 %v1562_v16 }
 0x3bc   : > { %v1974_v19 = vpop.eup %1973  ;;  %v1565_v26 = vadd.f32 1.0, %v1972_v44 }
 0x3bd   : > { %v1564_v42 = vadd.f32 1.0, %v1974_v19 }
 0x3be   : > { %1979 = vrcp.f32 %v1565_v26 }
 0x3bf   : > { %1981 = vrcp.f32 %v1564_v42 }
 0x3c4   : > { %v1976_v28 = vpop.eup %1975 }
 0x3c5   : > { %v1978_v31 = vpop.eup %1977  ;;  %1581 = vperm.xlu1 %1898, %v1976_v28  }
 0x3c6   : > { %1576 = vperm.xlu0 %1897, %v1978_v31  }
 0x3c8   : > { %v1980_v52 = vpop.eup %1979 }
 0x3c9   : > { %v1982_v10 = vpop.eup %1981 }
 0x3ca   : > { %1591 = vperm.xlu0 %1897, %v1980_v52   ;;  %1586 = vperm.xlu1 %1898, %v1982_v10  }
 0x3ce   : > { %1689 = vperm.xlu0 %1897, %v1686_v54   ;;  %1681 = vperm.xlu1 %1898, %v1678_v13  }
 0x444   : > { %v1582_v57 = vpop.permute.xlu1 %1581 }
 0x445   : > { %v1596_v12 = vmul.f32 %v1582_v57, %v2932_v29  ;;  %v1597_v23 = vmul.f32 %v1582_v57, %v2937_v51  ;;  %v1577_v61 = vpop.permute.xlu0 %1576 }
 0x446   : > { %v1594_v7 = vmul.f32 %v1577_v61, %v2862_v41  ;;  %v1595_v59 = vmul.f32 %v1577_v61, %v2865_v2  ;;  %v1602_v2 = vld [vmem:[%s3165_s12] sm:$0xff] }
 0x448   : > { %v1814_v27 = vpack.c.bf16 %v1597_v23, %v1595_v59  ;;  %v1816_v20 = vpack.c.bf16 %v1596_v12, %v1594_v7 }
 0x449   : > { %v1587_v3 = vpop.permute.xlu1 %1586  ;;  %v1592_v0 = vpop.permute.xlu0 %1591 }
 0x44a   : > { %v1598_v47 = vmul.f32 %v1587_v3, %v3033_v32  ;;  %v1599_v43 = vmul.f32 %v1587_v3, %v3035_v39  ;;  %v1600_v56 = vmul.f32 %v1592_v0, %v3027_v17  ;;  %v1601_v29 = vmul.f32 %v1592_v0, %v3029_v33  ;;  %1815 = vmatprep.subr.bf16.mxu1 %v1814_v27 }
 0x44b   : > { %1817 = vmatpush1.bf16.msra.mxu1 %v1816_v20 }
 0x44c   : > { %v1818_v51 = vpack.c.bf16 %v1601_v29, %v1599_v43  ;;  %v1820_v41 = vpack.c.bf16 %v1600_v56, %v1598_v47 }
 0x44d   : > { %v1682_v17 = vpop.permute.xlu1 %1681  ;;  %v1690_v15 = vpop.permute.xlu0 %1689 }
 0x44e   : > { %1819 = vmatprep.subr.bf16.mxu1 %v1818_v51 }
 0x44f   : > { %1821 = vmatpush1.bf16.msra.mxu1 %v1820_v41 }
 0x452   : > { %1806 = vmatmul.mubr.msk.f32.vlgmr.msra.gmra.mrb[0].mxu1 %vm1603_vm10, %v1602_v2 }
 0x525   : > { %v1673_v32 = vpop.f32.mrb[0].mxu1 }
 0x526   : > { %v1684_v33 = vmul.f32 %v1682_v17, %v1673_v32  ;;  %v1675_v39 = vpop.f32.mrb[1].mxu1 }
 0x527   : > { %v1685_v25 = vmul.f32 %v1682_v17, %v1675_v39 }
 0x528   : > { %v1692_v58 = vadd.f32 %v1690_v15, %v1684_v33 }
 0x529   : > { %v1693_v37 = vadd.f32 %v1690_v15, %v1685_v25 }
 0x52a   : > { %v1694_v14 = vadd.f32 %v1983_v35, %v1692_v58 }
 0x52b   : > { %v1695_v55 = vadd.f32 %v1984_v4, %v1693_v37 }
 0x52c   : > { %1696 = vst [vmem:[%s487_s30] sm:$0xff] %v1694_v14 }
 0x52d   : > { %1697 = vst [vmem:[%s487_s30 + $0x8] sm:$0xff] %v1695_v55 }
 0x52e   : > { %1998 = shalt.err (!%p1995_p3)
}
 0x52f   : > { %s1999_s29 = scalar_lea.hbm %s3111_s27, 256  ;;  %s2003_s17 = scalar_lea.hbm %s3168_s15, 512 }
 0x530   : > { %p2000_p4 = scmp.ne.s32.totalorder %s3111_s27, %s1999_s29  ;;  %p2004_p9 = scmp.lt.u32.totalorder %s3111_s27, %s3168_s15 }
 0x531   : > { %p2005_p10 = scmp.lt.u32.totalorder %s2003_s17, %s1999_s29  ;;  %p2007_p12 = scmp.lt.u32.totalorder %s1999_s29, %s3111_s27 }
 0x532   : > { %p2001_p7 = pnand %p2000_p4, %p2186_p5 }
 0x533   : > { %p2006_p11 = por %p2005_p10, %p2004_p9 }
 0x534   : > { %p2002_p8 = pneg %p2001_p7 }
 0x535   : > { %p2008_p13 = por %p2007_p12, %p2006_p11 }
 0x537   : > { %p2009_p0 = pnand %p2008_p13, %p2002_p8 }
 0x539   : > { %2012 = shalt.err (!%p2009_p0)
}
 0x53a   : > { %1822 = dma.vmem_to_hbm [thread:$0]  (%p2186_p5), %s3113_s16, 256, %s3111_s27, %s1699_s22  }
 0x53b PF: > { %s3258_s20 = sld [smem:[#allocation5_spill]]  ;;  %p1828_p1 = scmp.ge.s32.totalorder %s2047_s21, 2 }
 0x53d   : > { %p1825_p2 = pnand %p1828_p1, %p2190_p6 }
 0x541   : > { %s1725_s25 = sand.u32 1, %s3258_s20  }
 0x542   : > { %s1726_s26 = scalar_lea.sflag [#allocation3], %s1725_s25 }
 0x543   : > { %2030 = dma.done.wait (!%p1825_p2), %s1726_s26, 256  }
 0x544   : > { %2032 = vsyncadd (!%p1825_p2), %s1726_s26, 4294967040  ;;  %s3260_s21 = sld [smem:[#allocation7_spill]]  ;;  %s3261_s29 = sld [smem:[#allocation6_spill]] }
 0x545   : > { %s3262_s20 = sld [smem:[#allocation8_spill]]  ;;  %s3263_s18 = smov %s2039_s19 }
 0x54a   : > { %p25_p3 = scmp.ge.s32.totalorder %s3260_s21, 4   ;;  %s3264_s19 = smov %s3261_s29 }
 0x54c   :  { %27 = sbr.rel (!%p25_p3) target bundleno = 3 (0x3), region = 115 }
 0x553   :  { %1731 = vsyncpa [#allocation3], 1 }
 0x554   :  { %1733 = vsyncpa [#allocation3 + $0x1], 1 }

</bundles_post_ra>
